<compile_context>
chip_gen: v5e
topology: v5e:2x2
jax: 0.10.0
libtpu: 0.0.40
codegen_flags: <defaults>
</compile_context>

<pallas_src>
import functools
import numpy as np

import jax
import jax.numpy as jnp
from jax.experimental import pallas as pl
from jax.experimental.pallas import tpu as pltpu

_EPS = 1e-5
_CLS_PAD = 128  # lane-dense classifier output width (sliced back outside)


# --------------------------------------------------------------------- kernel helpers
def _bn_fused(h, gamma, beta):
    """BatchNorm1d, training-mode batch stats (biased var), fused affine.

    One pass over the node axis (mean and E[h^2]); scale/shift folded so the
    apply is just h*scale + shift.
    """
    mean = jnp.mean(h, axis=0, keepdims=True)
    msq = jnp.mean(h * h, axis=0, keepdims=True)
    var = msq - mean * mean
    scale = gamma * jax.lax.rsqrt(var + _EPS)
    shift = beta - mean * scale
    return h * scale + shift


# ------------------------------------------------------------------------ fused kernel
def network_cora_kernel(
    x_ref, a_ref,
    stem_wt_ref, stem_b_ref, stem_g_ref, stem_be_ref,
    pre_wt_ref, pre_b_ref, pre_g_ref, pre_be_ref,
    gcn_wt_ref, gcn_b_ref, gcn_g_ref, gcn_be_ref,
    cls_wt_ref, cls_b_ref,
    out_ref,
    *, groups, op_tgt, mid_node, layers, hidden,
):
    f32 = jnp.float32
    bf16 = jnp.bfloat16
    n_groups = len(groups)
    incoming = [sum(1 for t in op_tgt if t == i) for i in range(mid_node)]
    need_01 = {s for s, _ in groups} >= {0, 1}

    # Dense normalized adjacency (bf16 matmul operand), resident for the whole
    # pass. For non-toy N this should be a row-tiled grid axis instead.
    a = a_ref[...]

    # ---- stem: BatchNorm1d(Linear(x)) ----
    s = jnp.dot(x_ref[...].astype(bf16), stem_wt_ref[...],
                preferred_element_type=f32) + stem_b_ref[...]
    s = _bn_fused(s, stem_g_ref[...], stem_be_ref[...])
    s0 = s1 = s

    # ---- cells (statically unrolled over layers / DAG schedule) ----
    for l in range(layers):
        pw = pre_wt_ref[l]                      # (hp, 2*hidden) bf16 : [pre0 | pre1]
        s1_bf = s1.astype(bf16)
        if l == 0:
            # s0 is s1 (stem output): one lane-dense (N, hp) @ (hp, 2*hidden) dot
            h01 = jnp.dot(s1_bf, pw, preferred_element_type=f32)
        else:
            h0 = jnp.dot(s0.astype(bf16), pw[:, :hidden], preferred_element_type=f32)
            h1 = jnp.dot(s1_bf, pw[:, hidden:], preferred_element_type=f32)
            h01 = jnp.concatenate([h0, h1], axis=1)
        # one fused BN over both preprocess outputs (per-column stats independent)
        h01 = _bn_fused(h01 + pre_b_ref[l], pre_g_ref[l], pre_be_ref[l])
        ne = {0: h01[:, :hidden], 1: h01[:, hidden:]}

        # memoised A_norm @ relu(src).  Cell inputs 0/1 share the storage of
        # h01, so their aggregation fuses into a single 2*hidden-wide matmul.
        ar_cache = {}
        if need_01:
            ar01 = jnp.dot(a, jnp.maximum(h01, 0.0).astype(bf16),
                           preferred_element_type=f32).astype(bf16)
            ar_cache[0] = ar01[:, :hidden]
            ar_cache[1] = ar01[:, hidden:]

        def get_ar(src, ne=ne, ar_cache=ar_cache):
            if src not in ar_cache:
                ar_cache[src] = jnp.dot(
                    a, jnp.maximum(ne[src], 0.0).astype(bf16),
                    preferred_element_type=f32).astype(bf16)
            return ar_cache[src]

        mid_acc = [None] * mid_node
        remaining = list(incoming)
        for g, (src, ops) in enumerate(groups):
            gi = l * n_groups + g
            # all GCN ops sharing this source: ONE wide matmul + ONE fused BN
            h = jnp.dot(get_ar(src), gcn_wt_ref[gi],
                        preferred_element_type=f32) + gcn_b_ref[gi]
            h = _bn_fused(h, gcn_g_ref[gi], gcn_be_ref[gi])
            for j, t in enumerate(ops):
                tgt = op_tgt[t]
                sl = h[:, j * hidden:(j + 1) * hidden]
                mid_acc[tgt] = sl if mid_acc[tgt] is None else mid_acc[tgt] + sl
                remaining[tgt] -= 1
                if remaining[tgt] == 0:          # mid node complete -> usable as source
                    ne[2 + tgt] = mid_acc[tgt]

        # torch.cat(node_embedding[2:], dim=1): mid_node*hidden = 96 lanes
        s0, s1 = s1, jnp.concatenate([ne[2 + i] for i in range(mid_node)], axis=1)

    # ---- classifier, lane-padded to 128 output columns (unmasked vst) ----
    out_ref[...] = jnp.dot(s1.astype(bf16), cls_wt_ref[...],
                           preferred_element_type=f32) + cls_b_ref[...]


# ------------------------------------------------------------------------ pallas glue
def network_cora_forward(x, a_norm, kparams, groups, op_tgt,
                         mid_node, layers, hidden, num_class):
    n = x.shape[0]
    kernel = functools.partial(
        network_cora_kernel,
        groups=groups, op_tgt=op_tgt,
        mid_node=mid_node, layers=layers, hidden=hidden)

    args = (
        x, a_norm.astype(jnp.bfloat16),
        kparams["stem_wt"], kparams["stem_b"], kparams["stem_g"], kparams["stem_be"],
        kparams["pre_wt"], kparams["pre_b"], kparams["pre_g"], kparams["pre_be"],
        kparams["gcn_wt"], kparams["gcn_b"], kparams["gcn_g"], kparams["gcn_be"],
        kparams["cls_wt"], kparams["cls_b"],
    )
    # VMEM budget from the actual resident footprint (+ headroom); keeps us
    # honest against v7x's 64 MiB physical VMEM.
    arg_bytes = sum(int(v.nbytes) for v in args) + n * _CLS_PAD * 4
    vmem_limit = int(min(96 << 20, max(8 << 20, 4 * arg_bytes)))

    vmem = pl.BlockSpec(memory_space=pltpu.MemorySpace.VMEM)
    logits_pad = pl.pallas_call(
        kernel,
        out_shape=jax.ShapeDtypeStruct((n, _CLS_PAD), jnp.float32),
        in_specs=[vmem] * len(args),
        out_specs=vmem,
        compiler_params=pltpu.CompilerParams(vmem_limit_bytes=vmem_limit),
    )(*args)
    return logits_pad[:, :num_class]


# ------------------------------------------------------------- NetworkCORA __init__ plumbing
def build_structure(mat, genotype):
    """Faithful replication of the row/col/c_op derivation in NetworkCORA.__init__."""
    op_names, indices = zip(*genotype)
    col, row = np.nonzero(mat.T)
    c = 1
    while True:
        if c >= len(col):
            break
        if col[c - 1] == col[c] and row[c] > 1:
            row = np.delete(row, [c])
            col = np.delete(col, [c])
        c += 1
    c_op = []
    for r, cc in zip(row, col):
        c_op.append(op_names[mat[r, cc] - 1])
    row = np.array(row, copy=True)
    col = np.array(col, copy=True)
    row[row == 3] = 2
    row[row == 4] = 3
    row[row == 5] = 3
    row[row == 6] = 4
    row[row == 7] = 4
    col[col == 3] = 2
    col[col == 4] = 3
    col[col == 5] = 3
    col[col == 6] = 4
    col[col == 7] = 4
    return c_op, row, col


def build_schedule(row, col, mid_node):
    """Static topological schedule: list of (source_node, (op indices,)) groups.

    All ops sharing a source that is already available are fused into one
    wide matmul; a mid node becomes an available source once all of its
    incoming ops have been scheduled in earlier groups.
    """
    n_ops = len(row)
    row = [int(r) for r in row]
    col = [int(c) for c in col]
    incoming = {i: [t for t in range(n_ops) if col[t] == 2 + i] for i in range(mid_node)}
    pending = set(range(n_ops))
    available = [0, 1]
    done = set()
    groups = []
    while pending:
        progressed = False
        for s in list(available):
            ops_s = tuple(t for t in sorted(pending) if row[t] == s)
            if ops_s:
                groups.append((s, ops_s))
                pending.difference_update(ops_s)
                done.update(ops_s)
                progressed = True
        for i in range(mid_node):
            node = 2 + i
            if node not in available and all(t in done for t in incoming[i]):
                available.append(node)
        if not progressed:
            raise ValueError("unschedulable cell DAG")
    return tuple(groups)


def gcn_norm_dense(edge_index, num_nodes):
    """Dense D^{-1/2}(A + I)D^{-1/2}, i.e. PyG GCNConv normalization with self-loops."""
    src, dst = edge_index
    A = jnp.zeros((num_nodes, num_nodes), jnp.float32).at[dst, src].add(1.0)
    A_hat = A + jnp.eye(num_nodes, dtype=jnp.float32)
    deg = jnp.sum(A_hat, axis=1)
    dinv = 1.0 / jnp.sqrt(deg)
    return dinv[:, None] * A_hat * dinv[None, :]


# ---------------------------------------------------------------------------- parameters
def _uniform(key, shape, bound):
    return jax.random.uniform(key, shape, jnp.float32, minval=-bound, maxval=bound)


def init_params(key, input_dim, hidden_dim, mid_node, layers, num_class, n_ops):
    """Natural (per-op, f32) parameter layout matching the PyTorch module."""
    hp = hidden_dim * mid_node
    k = jax.random.split(key, 7)
    p = {}
    bound = 1.0 / np.sqrt(input_dim)
    p["stem_wt"] = _uniform(k[0], (input_dim, hp), bound)          # stored as W^T
    p["stem_b"] = _uniform(k[1], (1, hp), bound)
    p["stem_g"] = jnp.ones((1, hp), jnp.float32)
    p["stem_be"] = jnp.zeros((1, hp), jnp.float32)
    bound = 1.0 / np.sqrt(hp)
    p["pre_wt"] = _uniform(k[2], (layers * 2, hp, hidden_dim), bound)
    p["pre_b"] = _uniform(k[3], (layers * 2, 1, hidden_dim), bound)
    p["pre_g"] = jnp.ones((layers * 2, 1, hidden_dim), jnp.float32)
    p["pre_be"] = jnp.zeros((layers * 2, 1, hidden_dim), jnp.float32)
    bound = 1.0 / np.sqrt(hidden_dim)
    p["gcn_wt"] = _uniform(k[4], (layers * n_ops, hidden_dim, hidden_dim), bound)
    p["gcn_b"] = jnp.zeros((layers * n_ops, 1, hidden_dim), jnp.float32)   # GCNConv bias zero-init
    p["gcn_g"] = jnp.ones((layers * n_ops, 1, hidden_dim), jnp.float32)
    p["gcn_be"] = jnp.zeros((layers * n_ops, 1, hidden_dim), jnp.float32)
    bound = 1.0 / np.sqrt(hp)
    p["cls_wt"] = _uniform(k[5], (hp, num_class), bound)
    p["cls_b"] = _uniform(k[6], (1, num_class), bound)
    return p


def pack_params(p, groups, layers, mid_node, hidden, num_class, n_ops):
    """Lane-dense, grouped, bf16-matmul-operand layout consumed by the kernel."""
    bf16 = jnp.bfloat16
    hp = hidden * mid_node
    max_gw = max(len(ops) for _, ops in groups) * hidden

    kp = {"stem_wt": p["stem_wt"].astype(bf16),
          "stem_b": p["stem_b"], "stem_g": p["stem_g"], "stem_be": p["stem_be"]}

    def cat_pre(a):
        return jnp.stack([jnp.concatenate([a[2 * l], a[2 * l + 1]], axis=-1)
                          for l in range(layers)])

    kp["pre_wt"] = cat_pre(p["pre_wt"]).astype(bf16)      # (layers, hp, 2*hidden)
    kp["pre_b"] = cat_pre(p["pre_b"])                     # (layers, 1, 2*hidden)
    kp["pre_g"] = cat_pre(p["pre_g"])
    kp["pre_be"] = cat_pre(p["pre_be"])

    gw, gb, gg, gbe = [], [], [], []
    for l in range(layers):
        for _, ops in groups:
            w = jnp.concatenate([p["gcn_wt"][l * n_ops + t] for t in ops], axis=-1)
            b = jnp.concatenate([p["gcn_b"][l * n_ops + t] for t in ops], axis=-1)
            g = jnp.concatenate([p["gcn_g"][l * n_ops + t] for t in ops], axis=-1)
            be = jnp.concatenate([p["gcn_be"][l * n_ops + t] for t in ops], axis=-1)
            pad = max_gw - w.shape[-1]
            if pad:   # padded columns: zero weights/bias/beta, gamma=1 -> BN output 0, never read
                w = jnp.pad(w, ((0, 0), (0, pad)))
                b = jnp.pad(b, ((0, 0), (0, pad)))
                g = jnp.pad(g, ((0, 0), (0, pad)), constant_values=1.0)
                be = jnp.pad(be, ((0, 0), (0, pad)))
            gw.append(w); gb.append(b); gg.append(g); gbe.append(be)
    kp["gcn_wt"] = jnp.stack(gw).astype(bf16)             # (layers*n_groups, hidden, max_gw)
    kp["gcn_b"] = jnp.stack(gb)
    kp["gcn_g"] = jnp.stack(gg)
    kp["gcn_be"] = jnp.stack(gbe)

    kp["cls_wt"] = (jnp.zeros((hp, _CLS_PAD), jnp.float32)
                    .at[:, :num_class].set(p["cls_wt"])).astype(bf16)
    kp["cls_b"] = jnp.zeros((1, _CLS_PAD), jnp.float32).at[:, :num_class].set(p["cls_b"])
    return kp


# ------------------------------------------------------------------- pure-JAX f32 reference
def network_cora_ref(x, a, p, row, col, mid_node, layers):
    def bn(h, g, b):
        m = jnp.mean(h, axis=0, keepdims=True)
        v = jnp.mean((h - m) ** 2, axis=0, keepdims=True)
        return g * (h - m) / jnp.sqrt(v + _EPS) + b

    n_ops = len(row)
    s = bn(x @ p["stem_wt"] + p["stem_b"], p["stem_g"], p["stem_be"])
    s0 = s1 = s
    for l in range(layers):
        ne = []
        for pi, src in enumerate((s0, s1)):
            idx = 2 * l + pi
            ne.append(bn(src @ p["pre_wt"][idx] + p["pre_b"][idx],
                         p["pre_g"][idx], p["pre_be"][idx]))
        for i in range(mid_node):
            acc = None
            for t in range(n_ops):
                if int(col[t]) != 2 + i:
                    continue
                gidx = l * n_ops + t
                h = a @ (jnp.maximum(ne[int(row[t])], 0.0) @ p["gcn_wt"][gidx]) + p["gcn_b"][gidx]
                h = bn(h, p["gcn_g"][gidx], p["gcn_be"][gidx])
                acc = h if acc is None else acc + h
            ne.append(acc)
        s0, s1 = s1, jnp.concatenate(ne[2:], axis=1)
    return s1 @ p["cls_wt"] + p["cls_b"]


# ---------------------------------------------------------------------------------- main
if __name__ == "__main__":
    # hyper-parameters (args)
    N = 16            # number of graph nodes
    INPUT_DIM = 16
    HIDDEN_DIM = 32
    MID_NODE = 3
    LAYERS = 2
    NUM_CLASS = 7

    # cell DAG: 8-node mat, collapsed by __init__ into (2 inputs + 3 mid nodes)
    mat = np.zeros((8, 8), dtype=np.int64)
    mat[0, 2] = 1
    mat[1, 3] = 1
    mat[0, 4] = 1
    mat[2, 5] = 1
    mat[1, 6] = 1
    mat[3, 7] = 1
    genotype = [("GCN", 0)]
    c_op, row, col = build_structure(mat, genotype)
    assert all(op == "GCN" for op in c_op)
    # TODO(synk): Transformer / pe_Transformer / Big_Transformer branches of `operation`
    #             are not exercised by this genotype and are not implemented.
    n_ops = len(c_op)
    groups = build_schedule(row, col, MID_NODE)           # static fused-matmul schedule
    op_tgt = tuple(int(c) - 2 for c in col)                # target mid node per op

    # graph: undirected ring over N nodes
    src = np.concatenate([np.arange(N), (np.arange(N) + 1) % N])
    dst = np.concatenate([(np.arange(N) + 1) % N, np.arange(N)])
    edge_index = jnp.asarray(np.stack([src, dst]), dtype=jnp.int32)
    a_norm = gcn_norm_dense(edge_index, N)

    # deterministic parameters + input
    key = jax.random.PRNGKey(0)
    k_param, k_x = jax.random.split(key)
    params = init_params(k_param, INPUT_DIM, HIDDEN_DIM, MID_NODE, LAYERS, NUM_CLASS, n_ops)
    kparams = pack_params(params, groups, LAYERS, MID_NODE, HIDDEN_DIM, NUM_CLASS, n_ops)
    x = jax.random.normal(k_x, (N, INPUT_DIM), jnp.float32)

    logits = network_cora_forward(x, a_norm, kparams, groups, op_tgt,
                                  MID_NODE, LAYERS, HIDDEN_DIM, NUM_CLASS)
    logits = jax.block_until_ready(logits)

    assert logits.shape == (N, NUM_CLASS) and logits.dtype == jnp.float32
    assert bool(jnp.all(jnp.isfinite(logits)))

    # validate against the pure-JAX f32 reference (bf16 matmuls + fused BN only
    # change rounding slightly at these scales)
    ref = network_cora_ref(x, a_norm, params, row, col, MID_NODE, LAYERS)
    assert float(jnp.max(jnp.abs(logits - ref))) < 0.25
    print("KERNEL_OK")
</pallas_src>

<mosaic_0001>
module attributes {stable_mosaic.version = 11 : i64} {
  func.func @network_cora_kernel(%arg0: memref<16x16xf32, #tpu.memory_space<vmem>>, %arg1: memref<16x16xbf16, #tpu.memory_space<vmem>>, %arg2: memref<16x96xbf16, #tpu.memory_space<vmem>>, %arg3: memref<1x96xf32, #tpu.memory_space<vmem>>, %arg4: memref<1x96xf32, #tpu.memory_space<vmem>>, %arg5: memref<1x96xf32, #tpu.memory_space<vmem>>, %arg6: memref<2x96x64xbf16, #tpu.memory_space<vmem>>, %arg7: memref<2x1x64xf32, #tpu.memory_space<vmem>>, %arg8: memref<2x1x64xf32, #tpu.memory_space<vmem>>, %arg9: memref<2x1x64xf32, #tpu.memory_space<vmem>>, %arg10: memref<6x32x64xbf16, #tpu.memory_space<vmem>>, %arg11: memref<6x1x64xf32, #tpu.memory_space<vmem>>, %arg12: memref<6x1x64xf32, #tpu.memory_space<vmem>>, %arg13: memref<6x1x64xf32, #tpu.memory_space<vmem>>, %arg14: memref<96x128xbf16, #tpu.memory_space<vmem>>, %arg15: memref<1x128xf32, #tpu.memory_space<vmem>>, %arg16: memref<16x128xf32, #tpu.memory_space<vmem>>) attributes {dimension_semantics = [], scalar_prefetch = 0 : i64, scratch_operands = 0 : i64, tpu.core_type = #tpu.core_type<tc>} {
    %c0 = arith.constant 0 : index
    %c0_0 = arith.constant 0 : index
    %0 = vector.load %arg1[%c0, %c0_0] : memref<16x16xbf16, #tpu.memory_space<vmem>>, vector<16x16xbf16>
    %c0_1 = arith.constant 0 : index
    %c0_2 = arith.constant 0 : index
    %1 = vector.load %arg0[%c0_1, %c0_2] : memref<16x16xf32, #tpu.memory_space<vmem>>, vector<16x16xf32>
    %2 = arith.truncf %1 : vector<16x16xf32> to vector<16x16xbf16>
    %c0_3 = arith.constant 0 : index
    %c0_4 = arith.constant 0 : index
    %3 = vector.load %arg2[%c0_3, %c0_4] : memref<16x96xbf16, #tpu.memory_space<vmem>>, vector<16x96xbf16>
    %cst = arith.constant dense<0.000000e+00> : vector<16x96xf32>
    %4 = tpu.matmul %2, %3, %cst {dimension_numbers = #tpu.dot_dimension_numbers<[1], [0], [0], [1], [0, 0, 1, 1], [], []>} : vector<16x16xbf16>, vector<16x96xbf16>, vector<16x96xf32> -> vector<16x96xf32>
    %c0_5 = arith.constant 0 : index
    %c0_6 = arith.constant 0 : index
    %5 = vector.load %arg3[%c0_5, %c0_6] : memref<1x96xf32, #tpu.memory_space<vmem>>, vector<1x96xf32>
    %6 = vector.broadcast %5 : vector<1x96xf32> to vector<16x96xf32>
    %7 = arith.addf %4, %6 : vector<16x96xf32>
    %c0_7 = arith.constant 0 : index
    %c0_8 = arith.constant 0 : index
    %8 = vector.load %arg4[%c0_7, %c0_8] : memref<1x96xf32, #tpu.memory_space<vmem>>, vector<1x96xf32>
    %c0_9 = arith.constant 0 : index
    %c0_10 = arith.constant 0 : index
    %9 = vector.load %arg5[%c0_9, %c0_10] : memref<1x96xf32, #tpu.memory_space<vmem>>, vector<1x96xf32>
    %cst_11 = arith.constant dense<0.000000e+00> : vector<96xf32>
    %10 = vector.multi_reduction <add>, %7, %cst_11 [0] : vector<16x96xf32> to vector<96xf32>
    %11 = vector.shape_cast %10 : vector<96xf32> to vector<1x96xf32>
    %cst_12 = arith.constant 1.600000e+01 : f32
    %12 = vector.broadcast %cst_12 : f32 to vector<1x96xf32>
    %13 = arith.divf %11, %12 : vector<1x96xf32>
    %14 = arith.mulf %7, %7 : vector<16x96xf32>
    %cst_13 = arith.constant dense<0.000000e+00> : vector<96xf32>
    %15 = vector.multi_reduction <add>, %14, %cst_13 [0] : vector<16x96xf32> to vector<96xf32>
    %16 = vector.shape_cast %15 : vector<96xf32> to vector<1x96xf32>
    %cst_14 = arith.constant 1.600000e+01 : f32
    %17 = vector.broadcast %cst_14 : f32 to vector<1x96xf32>
    %18 = arith.divf %16, %17 : vector<1x96xf32>
    %19 = arith.mulf %13, %13 : vector<1x96xf32>
    %20 = arith.subf %18, %19 : vector<1x96xf32>
    %cst_15 = arith.constant 9.99999974E-6 : f32
    %21 = vector.broadcast %cst_15 : f32 to vector<1x96xf32>
    %22 = arith.addf %20, %21 : vector<1x96xf32>
    %23 = math.rsqrt %22 : vector<1x96xf32>
    %24 = arith.mulf %8, %23 : vector<1x96xf32>
    %25 = arith.mulf %13, %24 : vector<1x96xf32>
    %26 = arith.subf %9, %25 : vector<1x96xf32>
    %27 = vector.broadcast %24 : vector<1x96xf32> to vector<16x96xf32>
    %28 = arith.mulf %7, %27 : vector<16x96xf32>
    %29 = vector.broadcast %26 : vector<1x96xf32> to vector<16x96xf32>
    %30 = arith.addf %28, %29 : vector<16x96xf32>
    %c0_16 = arith.constant 0 : index
    %c0_17 = arith.constant 0 : index
    %c0_18 = arith.constant 0 : index
    %31 = vector.load %arg6[%c0_16, %c0_17, %c0_18] : memref<2x96x64xbf16, #tpu.memory_space<vmem>>, vector<1x96x64xbf16>
    %32 = vector.shape_cast %31 : vector<1x96x64xbf16> to vector<96x64xbf16>
    %33 = arith.truncf %30 : vector<16x96xf32> to vector<16x96xbf16>
    %cst_19 = arith.constant dense<0.000000e+00> : vector<16x64xf32>
    %34 = tpu.matmul %33, %32, %cst_19 {dimension_numbers = #tpu.dot_dimension_numbers<[1], [0], [0], [1], [0, 0, 1, 1], [], []>} : vector<16x96xbf16>, vector<96x64xbf16>, vector<16x64xf32> -> vector<16x64xf32>
    %c0_20 = arith.constant 0 : index
    %c0_21 = arith.constant 0 : index
    %c0_22 = arith.constant 0 : index
    %35 = vector.load %arg7[%c0_20, %c0_21, %c0_22] : memref<2x1x64xf32, #tpu.memory_space<vmem>>, vector<1x1x64xf32>
    %36 = vector.shape_cast %35 : vector<1x1x64xf32> to vector<1x64xf32>
    %37 = vector.broadcast %36 : vector<1x64xf32> to vector<16x64xf32>
    %38 = arith.addf %34, %37 : vector<16x64xf32>
    %c0_23 = arith.constant 0 : index
    %c0_24 = arith.constant 0 : index
    %c0_25 = arith.constant 0 : index
    %39 = vector.load %arg8[%c0_23, %c0_24, %c0_25] : memref<2x1x64xf32, #tpu.memory_space<vmem>>, vector<1x1x64xf32>
    %40 = vector.shape_cast %39 : vector<1x1x64xf32> to vector<1x64xf32>
    %c0_26 = arith.constant 0 : index
    %c0_27 = arith.constant 0 : index
    %c0_28 = arith.constant 0 : index
    %41 = vector.load %arg9[%c0_26, %c0_27, %c0_28] : memref<2x1x64xf32, #tpu.memory_space<vmem>>, vector<1x1x64xf32>
    %42 = vector.shape_cast %41 : vector<1x1x64xf32> to vector<1x64xf32>
    %cst_29 = arith.constant dense<0.000000e+00> : vector<64xf32>
    %43 = vector.multi_reduction <add>, %38, %cst_29 [0] : vector<16x64xf32> to vector<64xf32>
    %44 = vector.shape_cast %43 : vector<64xf32> to vector<1x64xf32>
    %cst_30 = arith.constant 1.600000e+01 : f32
    %45 = vector.broadcast %cst_30 : f32 to vector<1x64xf32>
    %46 = arith.divf %44, %45 : vector<1x64xf32>
    %47 = arith.mulf %38, %38 : vector<16x64xf32>
    %cst_31 = arith.constant dense<0.000000e+00> : vector<64xf32>
    %48 = vector.multi_reduction <add>, %47, %cst_31 [0] : vector<16x64xf32> to vector<64xf32>
    %49 = vector.shape_cast %48 : vector<64xf32> to vector<1x64xf32>
    %cst_32 = arith.constant 1.600000e+01 : f32
    %50 = vector.broadcast %cst_32 : f32 to vector<1x64xf32>
    %51 = arith.divf %49, %50 : vector<1x64xf32>
    %52 = arith.mulf %46, %46 : vector<1x64xf32>
    %53 = arith.subf %51, %52 : vector<1x64xf32>
    %cst_33 = arith.constant 9.99999974E-6 : f32
    %54 = vector.broadcast %cst_33 : f32 to vector<1x64xf32>
    %55 = arith.addf %53, %54 : vector<1x64xf32>
    %56 = math.rsqrt %55 : vector<1x64xf32>
    %57 = arith.mulf %40, %56 : vector<1x64xf32>
    %58 = arith.mulf %46, %57 : vector<1x64xf32>
    %59 = arith.subf %42, %58 : vector<1x64xf32>
    %60 = vector.broadcast %57 : vector<1x64xf32> to vector<16x64xf32>
    %61 = arith.mulf %38, %60 : vector<16x64xf32>
    %62 = vector.broadcast %59 : vector<1x64xf32> to vector<16x64xf32>
    %63 = arith.addf %61, %62 : vector<16x64xf32>
    %cst_34 = arith.constant 0.000000e+00 : f32
    %64 = vector.broadcast %cst_34 : f32 to vector<16x64xf32>
    %65 = arith.maximumf %63, %64 : vector<16x64xf32>
    %66 = arith.truncf %65 : vector<16x64xf32> to vector<16x64xbf16>
    %cst_35 = arith.constant dense<0.000000e+00> : vector<16x64xf32>
    %67 = tpu.matmul %0, %66, %cst_35 {dimension_numbers = #tpu.dot_dimension_numbers<[1], [0], [0], [1], [0, 0, 1, 1], [], []>} : vector<16x16xbf16>, vector<16x64xbf16>, vector<16x64xf32> -> vector<16x64xf32>
    %68 = arith.truncf %67 : vector<16x64xf32> to vector<16x64xbf16>
    %69 = vector.extract_strided_slice %68 {offsets = [0, 0], sizes = [16, 32], strides = [1, 1]} : vector<16x64xbf16> to vector<16x32xbf16>
    %70 = vector.extract_strided_slice %68 {offsets = [0, 32], sizes = [16, 32], strides = [1, 1]} : vector<16x64xbf16> to vector<16x32xbf16>
    %c0_36 = arith.constant 0 : index
    %c0_37 = arith.constant 0 : index
    %c0_38 = arith.constant 0 : index
    %71 = vector.load %arg10[%c0_36, %c0_37, %c0_38] : memref<6x32x64xbf16, #tpu.memory_space<vmem>>, vector<1x32x64xbf16>
    %72 = vector.shape_cast %71 : vector<1x32x64xbf16> to vector<32x64xbf16>
    %cst_39 = arith.constant dense<0.000000e+00> : vector<16x64xf32>
    %73 = tpu.matmul %69, %72, %cst_39 {dimension_numbers = #tpu.dot_dimension_numbers<[1], [0], [0], [1], [0, 0, 1, 1], [], []>} : vector<16x32xbf16>, vector<32x64xbf16>, vector<16x64xf32> -> vector<16x64xf32>
    %c0_40 = arith.constant 0 : index
    %c0_41 = arith.constant 0 : index
    %c0_42 = arith.constant 0 : index
    %74 = vector.load %arg11[%c0_40, %c0_41, %c0_42] : memref<6x1x64xf32, #tpu.memory_space<vmem>>, vector<1x1x64xf32>
    %75 = vector.shape_cast %74 : vector<1x1x64xf32> to vector<1x64xf32>
    %76 = vector.broadcast %75 : vector<1x64xf32> to vector<16x64xf32>
    %77 = arith.addf %73, %76 : vector<16x64xf32>
    %c0_43 = arith.constant 0 : index
    %c0_44 = arith.constant 0 : index
    %c0_45 = arith.constant 0 : index
    %78 = vector.load %arg12[%c0_43, %c0_44, %c0_45] : memref<6x1x64xf32, #tpu.memory_space<vmem>>, vector<1x1x64xf32>
    %79 = vector.shape_cast %78 : vector<1x1x64xf32> to vector<1x64xf32>
    %c0_46 = arith.constant 0 : index
    %c0_47 = arith.constant 0 : index
    %c0_48 = arith.constant 0 : index
    %80 = vector.load %arg13[%c0_46, %c0_47, %c0_48] : memref<6x1x64xf32, #tpu.memory_space<vmem>>, vector<1x1x64xf32>
    %81 = vector.shape_cast %80 : vector<1x1x64xf32> to vector<1x64xf32>
    %cst_49 = arith.constant dense<0.000000e+00> : vector<64xf32>
    %82 = vector.multi_reduction <add>, %77, %cst_49 [0] : vector<16x64xf32> to vector<64xf32>
    %83 = vector.shape_cast %82 : vector<64xf32> to vector<1x64xf32>
    %cst_50 = arith.constant 1.600000e+01 : f32
    %84 = vector.broadcast %cst_50 : f32 to vector<1x64xf32>
    %85 = arith.divf %83, %84 : vector<1x64xf32>
    %86 = arith.mulf %77, %77 : vector<16x64xf32>
    %cst_51 = arith.constant dense<0.000000e+00> : vector<64xf32>
    %87 = vector.multi_reduction <add>, %86, %cst_51 [0] : vector<16x64xf32> to vector<64xf32>
    %88 = vector.shape_cast %87 : vector<64xf32> to vector<1x64xf32>
    %cst_52 = arith.constant 1.600000e+01 : f32
    %89 = vector.broadcast %cst_52 : f32 to vector<1x64xf32>
    %90 = arith.divf %88, %89 : vector<1x64xf32>
    %91 = arith.mulf %85, %85 : vector<1x64xf32>
    %92 = arith.subf %90, %91 : vector<1x64xf32>
    %cst_53 = arith.constant 9.99999974E-6 : f32
    %93 = vector.broadcast %cst_53 : f32 to vector<1x64xf32>
    %94 = arith.addf %92, %93 : vector<1x64xf32>
    %95 = math.rsqrt %94 : vector<1x64xf32>
    %96 = arith.mulf %79, %95 : vector<1x64xf32>
    %97 = arith.mulf %85, %96 : vector<1x64xf32>
    %98 = arith.subf %81, %97 : vector<1x64xf32>
    %99 = vector.broadcast %96 : vector<1x64xf32> to vector<16x64xf32>
    %100 = arith.mulf %77, %99 : vector<16x64xf32>
    %101 = vector.broadcast %98 : vector<1x64xf32> to vector<16x64xf32>
    %102 = arith.addf %100, %101 : vector<16x64xf32>
    %103 = vector.extract_strided_slice %102 {offsets = [0, 0], sizes = [16, 32], strides = [1, 1]} : vector<16x64xf32> to vector<16x32xf32>
    %104 = vector.extract_strided_slice %102 {offsets = [0, 32], sizes = [16, 32], strides = [1, 1]} : vector<16x64xf32> to vector<16x32xf32>
    %c1 = arith.constant 1 : index
    %c0_54 = arith.constant 0 : index
    %c0_55 = arith.constant 0 : index
    %105 = vector.load %arg10[%c1, %c0_54, %c0_55] : memref<6x32x64xbf16, #tpu.memory_space<vmem>>, vector<1x32x64xbf16>
    %106 = vector.shape_cast %105 : vector<1x32x64xbf16> to vector<32x64xbf16>
    %cst_56 = arith.constant dense<0.000000e+00> : vector<16x64xf32>
    %107 = tpu.matmul %70, %106, %cst_56 {dimension_numbers = #tpu.dot_dimension_numbers<[1], [0], [0], [1], [0, 0, 1, 1], [], []>} : vector<16x32xbf16>, vector<32x64xbf16>, vector<16x64xf32> -> vector<16x64xf32>
    %c1_57 = arith.constant 1 : index
    %c0_58 = arith.constant 0 : index
    %c0_59 = arith.constant 0 : index
    %108 = vector.load %arg11[%c1_57, %c0_58, %c0_59] : memref<6x1x64xf32, #tpu.memory_space<vmem>>, vector<1x1x64xf32>
    %109 = vector.shape_cast %108 : vector<1x1x64xf32> to vector<1x64xf32>
    %110 = vector.broadcast %109 : vector<1x64xf32> to vector<16x64xf32>
    %111 = arith.addf %107, %110 : vector<16x64xf32>
    %c1_60 = arith.constant 1 : index
    %c0_61 = arith.constant 0 : index
    %c0_62 = arith.constant 0 : index
    %112 = vector.load %arg12[%c1_60, %c0_61, %c0_62] : memref<6x1x64xf32, #tpu.memory_space<vmem>>, vector<1x1x64xf32>
    %113 = vector.shape_cast %112 : vector<1x1x64xf32> to vector<1x64xf32>
    %c1_63 = arith.constant 1 : index
    %c0_64 = arith.constant 0 : index
    %c0_65 = arith.constant 0 : index
    %114 = vector.load %arg13[%c1_63, %c0_64, %c0_65] : memref<6x1x64xf32, #tpu.memory_space<vmem>>, vector<1x1x64xf32>
    %115 = vector.shape_cast %114 : vector<1x1x64xf32> to vector<1x64xf32>
    %cst_66 = arith.constant dense<0.000000e+00> : vector<64xf32>
    %116 = vector.multi_reduction <add>, %111, %cst_66 [0] : vector<16x64xf32> to vector<64xf32>
    %117 = vector.shape_cast %116 : vector<64xf32> to vector<1x64xf32>
    %cst_67 = arith.constant 1.600000e+01 : f32
    %118 = vector.broadcast %cst_67 : f32 to vector<1x64xf32>
    %119 = arith.divf %117, %118 : vector<1x64xf32>
    %120 = arith.mulf %111, %111 : vector<16x64xf32>
    %cst_68 = arith.constant dense<0.000000e+00> : vector<64xf32>
    %121 = vector.multi_reduction <add>, %120, %cst_68 [0] : vector<16x64xf32> to vector<64xf32>
    %122 = vector.shape_cast %121 : vector<64xf32> to vector<1x64xf32>
    %cst_69 = arith.constant 1.600000e+01 : f32
    %123 = vector.broadcast %cst_69 : f32 to vector<1x64xf32>
    %124 = arith.divf %122, %123 : vector<1x64xf32>
    %125 = arith.mulf %119, %119 : vector<1x64xf32>
    %126 = arith.subf %124, %125 : vector<1x64xf32>
    %cst_70 = arith.constant 9.99999974E-6 : f32
    %127 = vector.broadcast %cst_70 : f32 to vector<1x64xf32>
    %128 = arith.addf %126, %127 : vector<1x64xf32>
    %129 = math.rsqrt %128 : vector<1x64xf32>
    %130 = arith.mulf %113, %129 : vector<1x64xf32>
    %131 = arith.mulf %119, %130 : vector<1x64xf32>
    %132 = arith.subf %115, %131 : vector<1x64xf32>
    %133 = vector.broadcast %130 : vector<1x64xf32> to vector<16x64xf32>
    %134 = arith.mulf %111, %133 : vector<16x64xf32>
    %135 = vector.broadcast %132 : vector<1x64xf32> to vector<16x64xf32>
    %136 = arith.addf %134, %135 : vector<16x64xf32>
    %137 = vector.extract_strided_slice %136 {offsets = [0, 0], sizes = [16, 32], strides = [1, 1]} : vector<16x64xf32> to vector<16x32xf32>
    %138 = arith.addf %103, %137 : vector<16x32xf32>
    %139 = vector.extract_strided_slice %136 {offsets = [0, 32], sizes = [16, 32], strides = [1, 1]} : vector<16x64xf32> to vector<16x32xf32>
    %cst_71 = arith.constant 0.000000e+00 : f32
    %140 = vector.broadcast %cst_71 : f32 to vector<16x32xf32>
    %141 = arith.maximumf %138, %140 : vector<16x32xf32>
    %142 = arith.truncf %141 : vector<16x32xf32> to vector<16x32xbf16>
    %cst_72 = arith.constant dense<0.000000e+00> : vector<16x32xf32>
    %143 = tpu.matmul %0, %142, %cst_72 {dimension_numbers = #tpu.dot_dimension_numbers<[1], [0], [0], [1], [0, 0, 1, 1], [], []>} : vector<16x16xbf16>, vector<16x32xbf16>, vector<16x32xf32> -> vector<16x32xf32>
    %144 = arith.truncf %143 : vector<16x32xf32> to vector<16x32xbf16>
    %c2 = arith.constant 2 : index
    %c0_73 = arith.constant 0 : index
    %c0_74 = arith.constant 0 : index
    %145 = vector.load %arg10[%c2, %c0_73, %c0_74] : memref<6x32x64xbf16, #tpu.memory_space<vmem>>, vector<1x32x64xbf16>
    %146 = vector.shape_cast %145 : vector<1x32x64xbf16> to vector<32x64xbf16>
    %cst_75 = arith.constant dense<0.000000e+00> : vector<16x64xf32>
    %147 = tpu.matmul %144, %146, %cst_75 {dimension_numbers = #tpu.dot_dimension_numbers<[1], [0], [0], [1], [0, 0, 1, 1], [], []>} : vector<16x32xbf16>, vector<32x64xbf16>, vector<16x64xf32> -> vector<16x64xf32>
    %c2_76 = arith.constant 2 : index
    %c0_77 = arith.constant 0 : index
    %c0_78 = arith.constant 0 : index
    %148 = vector.load %arg11[%c2_76, %c0_77, %c0_78] : memref<6x1x64xf32, #tpu.memory_space<vmem>>, vector<1x1x64xf32>
    %149 = vector.shape_cast %148 : vector<1x1x64xf32> to vector<1x64xf32>
    %150 = vector.broadcast %149 : vector<1x64xf32> to vector<16x64xf32>
    %151 = arith.addf %147, %150 : vector<16x64xf32>
    %c2_79 = arith.constant 2 : index
    %c0_80 = arith.constant 0 : index
    %c0_81 = arith.constant 0 : index
    %152 = vector.load %arg12[%c2_79, %c0_80, %c0_81] : memref<6x1x64xf32, #tpu.memory_space<vmem>>, vector<1x1x64xf32>
    %153 = vector.shape_cast %152 : vector<1x1x64xf32> to vector<1x64xf32>
    %c2_82 = arith.constant 2 : index
    %c0_83 = arith.constant 0 : index
    %c0_84 = arith.constant 0 : index
    %154 = vector.load %arg13[%c2_82, %c0_83, %c0_84] : memref<6x1x64xf32, #tpu.memory_space<vmem>>, vector<1x1x64xf32>
    %155 = vector.shape_cast %154 : vector<1x1x64xf32> to vector<1x64xf32>
    %cst_85 = arith.constant dense<0.000000e+00> : vector<64xf32>
    %156 = vector.multi_reduction <add>, %151, %cst_85 [0] : vector<16x64xf32> to vector<64xf32>
    %157 = vector.shape_cast %156 : vector<64xf32> to vector<1x64xf32>
    %cst_86 = arith.constant 1.600000e+01 : f32
    %158 = vector.broadcast %cst_86 : f32 to vector<1x64xf32>
    %159 = arith.divf %157, %158 : vector<1x64xf32>
    %160 = arith.mulf %151, %151 : vector<16x64xf32>
    %cst_87 = arith.constant dense<0.000000e+00> : vector<64xf32>
    %161 = vector.multi_reduction <add>, %160, %cst_87 [0] : vector<16x64xf32> to vector<64xf32>
    %162 = vector.shape_cast %161 : vector<64xf32> to vector<1x64xf32>
    %cst_88 = arith.constant 1.600000e+01 : f32
    %163 = vector.broadcast %cst_88 : f32 to vector<1x64xf32>
    %164 = arith.divf %162, %163 : vector<1x64xf32>
    %165 = arith.mulf %159, %159 : vector<1x64xf32>
    %166 = arith.subf %164, %165 : vector<1x64xf32>
    %cst_89 = arith.constant 9.99999974E-6 : f32
    %167 = vector.broadcast %cst_89 : f32 to vector<1x64xf32>
    %168 = arith.addf %166, %167 : vector<1x64xf32>
    %169 = math.rsqrt %168 : vector<1x64xf32>
    %170 = arith.mulf %153, %169 : vector<1x64xf32>
    %171 = arith.mulf %159, %170 : vector<1x64xf32>
    %172 = arith.subf %155, %171 : vector<1x64xf32>
    %173 = vector.broadcast %170 : vector<1x64xf32> to vector<16x64xf32>
    %174 = arith.mulf %151, %173 : vector<16x64xf32>
    %175 = vector.broadcast %172 : vector<1x64xf32> to vector<16x64xf32>
    %176 = arith.addf %174, %175 : vector<16x64xf32>
    %177 = vector.extract_strided_slice %176 {offsets = [0, 0], sizes = [16, 32], strides = [1, 1]} : vector<16x64xf32> to vector<16x32xf32>
    %178 = arith.addf %104, %177 : vector<16x32xf32>
    %179 = vector.extract_strided_slice %176 {offsets = [0, 32], sizes = [16, 32], strides = [1, 1]} : vector<16x64xf32> to vector<16x32xf32>
    %180 = arith.addf %139, %179 : vector<16x32xf32>
    %181 = tpu.concatenate %138, %178, %180 in 1 : vector<16x32xf32>, vector<16x32xf32>, vector<16x32xf32> -> vector<16x96xf32>
    %c1_90 = arith.constant 1 : index
    %c0_91 = arith.constant 0 : index
    %c0_92 = arith.constant 0 : index
    %182 = vector.load %arg6[%c1_90, %c0_91, %c0_92] : memref<2x96x64xbf16, #tpu.memory_space<vmem>>, vector<1x96x64xbf16>
    %183 = vector.shape_cast %182 : vector<1x96x64xbf16> to vector<96x64xbf16>
    %184 = arith.truncf %181 : vector<16x96xf32> to vector<16x96xbf16>
    %185 = arith.truncf %30 : vector<16x96xf32> to vector<16x96xbf16>
    %186 = vector.extract_strided_slice %183 {offsets = [0, 0], sizes = [96, 32], strides = [1, 1]} : vector<96x64xbf16> to vector<96x32xbf16>
    %cst_93 = arith.constant dense<0.000000e+00> : vector<16x32xf32>
    %187 = tpu.matmul %185, %186, %cst_93 {dimension_numbers = #tpu.dot_dimension_numbers<[1], [0], [0], [1], [0, 0, 1, 1], [], []>} : vector<16x96xbf16>, vector<96x32xbf16>, vector<16x32xf32> -> vector<16x32xf32>
    %188 = vector.extract_strided_slice %183 {offsets = [0, 32], sizes = [96, 32], strides = [1, 1]} : vector<96x64xbf16> to vector<96x32xbf16>
    %cst_94 = arith.constant dense<0.000000e+00> : vector<16x32xf32>
    %189 = tpu.matmul %184, %188, %cst_94 {dimension_numbers = #tpu.dot_dimension_numbers<[1], [0], [0], [1], [0, 0, 1, 1], [], []>} : vector<16x96xbf16>, vector<96x32xbf16>, vector<16x32xf32> -> vector<16x32xf32>
    %190 = tpu.concatenate %187, %189 in 1 : vector<16x32xf32>, vector<16x32xf32> -> vector<16x64xf32>
    %c1_95 = arith.constant 1 : index
    %c0_96 = arith.constant 0 : index
    %c0_97 = arith.constant 0 : index
    %191 = vector.load %arg7[%c1_95, %c0_96, %c0_97] : memref<2x1x64xf32, #tpu.memory_space<vmem>>, vector<1x1x64xf32>
    %192 = vector.shape_cast %191 : vector<1x1x64xf32> to vector<1x64xf32>
    %193 = vector.broadcast %192 : vector<1x64xf32> to vector<16x64xf32>
    %194 = arith.addf %190, %193 : vector<16x64xf32>
    %c1_98 = arith.constant 1 : index
    %c0_99 = arith.constant 0 : index
    %c0_100 = arith.constant 0 : index
    %195 = vector.load %arg8[%c1_98, %c0_99, %c0_100] : memref<2x1x64xf32, #tpu.memory_space<vmem>>, vector<1x1x64xf32>
    %196 = vector.shape_cast %195 : vector<1x1x64xf32> to vector<1x64xf32>
    %c1_101 = arith.constant 1 : index
    %c0_102 = arith.constant 0 : index
    %c0_103 = arith.constant 0 : index
    %197 = vector.load %arg9[%c1_101, %c0_102, %c0_103] : memref<2x1x64xf32, #tpu.memory_space<vmem>>, vector<1x1x64xf32>
    %198 = vector.shape_cast %197 : vector<1x1x64xf32> to vector<1x64xf32>
    %cst_104 = arith.constant dense<0.000000e+00> : vector<64xf32>
    %199 = vector.multi_reduction <add>, %194, %cst_104 [0] : vector<16x64xf32> to vector<64xf32>
    %200 = vector.shape_cast %199 : vector<64xf32> to vector<1x64xf32>
    %cst_105 = arith.constant 1.600000e+01 : f32
    %201 = vector.broadcast %cst_105 : f32 to vector<1x64xf32>
    %202 = arith.divf %200, %201 : vector<1x64xf32>
    %203 = arith.mulf %194, %194 : vector<16x64xf32>
    %cst_106 = arith.constant dense<0.000000e+00> : vector<64xf32>
    %204 = vector.multi_reduction <add>, %203, %cst_106 [0] : vector<16x64xf32> to vector<64xf32>
    %205 = vector.shape_cast %204 : vector<64xf32> to vector<1x64xf32>
    %cst_107 = arith.constant 1.600000e+01 : f32
    %206 = vector.broadcast %cst_107 : f32 to vector<1x64xf32>
    %207 = arith.divf %205, %206 : vector<1x64xf32>
    %208 = arith.mulf %202, %202 : vector<1x64xf32>
    %209 = arith.subf %207, %208 : vector<1x64xf32>
    %cst_108 = arith.constant 9.99999974E-6 : f32
    %210 = vector.broadcast %cst_108 : f32 to vector<1x64xf32>
    %211 = arith.addf %209, %210 : vector<1x64xf32>
    %212 = math.rsqrt %211 : vector<1x64xf32>
    %213 = arith.mulf %196, %212 : vector<1x64xf32>
    %214 = arith.mulf %202, %213 : vector<1x64xf32>
    %215 = arith.subf %198, %214 : vector<1x64xf32>
    %216 = vector.broadcast %213 : vector<1x64xf32> to vector<16x64xf32>
    %217 = arith.mulf %194, %216 : vector<16x64xf32>
    %218 = vector.broadcast %215 : vector<1x64xf32> to vector<16x64xf32>
    %219 = arith.addf %217, %218 : vector<16x64xf32>
    %cst_109 = arith.constant 0.000000e+00 : f32
    %220 = vector.broadcast %cst_109 : f32 to vector<16x64xf32>
    %221 = arith.maximumf %219, %220 : vector<16x64xf32>
    %222 = arith.truncf %221 : vector<16x64xf32> to vector<16x64xbf16>
    %cst_110 = arith.constant dense<0.000000e+00> : vector<16x64xf32>
    %223 = tpu.matmul %0, %222, %cst_110 {dimension_numbers = #tpu.dot_dimension_numbers<[1], [0], [0], [1], [0, 0, 1, 1], [], []>} : vector<16x16xbf16>, vector<16x64xbf16>, vector<16x64xf32> -> vector<16x64xf32>
    %224 = arith.truncf %223 : vector<16x64xf32> to vector<16x64xbf16>
    %225 = vector.extract_strided_slice %224 {offsets = [0, 0], sizes = [16, 32], strides = [1, 1]} : vector<16x64xbf16> to vector<16x32xbf16>
    %226 = vector.extract_strided_slice %224 {offsets = [0, 32], sizes = [16, 32], strides = [1, 1]} : vector<16x64xbf16> to vector<16x32xbf16>
    %c3 = arith.constant 3 : index
    %c0_111 = arith.constant 0 : index
    %c0_112 = arith.constant 0 : index
    %227 = vector.load %arg10[%c3, %c0_111, %c0_112] : memref<6x32x64xbf16, #tpu.memory_space<vmem>>, vector<1x32x64xbf16>
    %228 = vector.shape_cast %227 : vector<1x32x64xbf16> to vector<32x64xbf16>
    %cst_113 = arith.constant dense<0.000000e+00> : vector<16x64xf32>
    %229 = tpu.matmul %225, %228, %cst_113 {dimension_numbers = #tpu.dot_dimension_numbers<[1], [0], [0], [1], [0, 0, 1, 1], [], []>} : vector<16x32xbf16>, vector<32x64xbf16>, vector<16x64xf32> -> vector<16x64xf32>
    %c3_114 = arith.constant 3 : index
    %c0_115 = arith.constant 0 : index
    %c0_116 = arith.constant 0 : index
    %230 = vector.load %arg11[%c3_114, %c0_115, %c0_116] : memref<6x1x64xf32, #tpu.memory_space<vmem>>, vector<1x1x64xf32>
    %231 = vector.shape_cast %230 : vector<1x1x64xf32> to vector<1x64xf32>
    %232 = vector.broadcast %231 : vector<1x64xf32> to vector<16x64xf32>
    %233 = arith.addf %229, %232 : vector<16x64xf32>
    %c3_117 = arith.constant 3 : index
    %c0_118 = arith.constant 0 : index
    %c0_119 = arith.constant 0 : index
    %234 = vector.load %arg12[%c3_117, %c0_118, %c0_119] : memref<6x1x64xf32, #tpu.memory_space<vmem>>, vector<1x1x64xf32>
    %235 = vector.shape_cast %234 : vector<1x1x64xf32> to vector<1x64xf32>
    %c3_120 = arith.constant 3 : index
    %c0_121 = arith.constant 0 : index
    %c0_122 = arith.constant 0 : index
    %236 = vector.load %arg13[%c3_120, %c0_121, %c0_122] : memref<6x1x64xf32, #tpu.memory_space<vmem>>, vector<1x1x64xf32>
    %237 = vector.shape_cast %236 : vector<1x1x64xf32> to vector<1x64xf32>
    %cst_123 = arith.constant dense<0.000000e+00> : vector<64xf32>
    %238 = vector.multi_reduction <add>, %233, %cst_123 [0] : vector<16x64xf32> to vector<64xf32>
    %239 = vector.shape_cast %238 : vector<64xf32> to vector<1x64xf32>
    %cst_124 = arith.constant 1.600000e+01 : f32
    %240 = vector.broadcast %cst_124 : f32 to vector<1x64xf32>
    %241 = arith.divf %239, %240 : vector<1x64xf32>
    %242 = arith.mulf %233, %233 : vector<16x64xf32>
    %cst_125 = arith.constant dense<0.000000e+00> : vector<64xf32>
    %243 = vector.multi_reduction <add>, %242, %cst_125 [0] : vector<16x64xf32> to vector<64xf32>
    %244 = vector.shape_cast %243 : vector<64xf32> to vector<1x64xf32>
    %cst_126 = arith.constant 1.600000e+01 : f32
    %245 = vector.broadcast %cst_126 : f32 to vector<1x64xf32>
    %246 = arith.divf %244, %245 : vector<1x64xf32>
    %247 = arith.mulf %241, %241 : vector<1x64xf32>
    %248 = arith.subf %246, %247 : vector<1x64xf32>
    %cst_127 = arith.constant 9.99999974E-6 : f32
    %249 = vector.broadcast %cst_127 : f32 to vector<1x64xf32>
    %250 = arith.addf %248, %249 : vector<1x64xf32>
    %251 = math.rsqrt %250 : vector<1x64xf32>
    %252 = arith.mulf %235, %251 : vector<1x64xf32>
    %253 = arith.mulf %241, %252 : vector<1x64xf32>
    %254 = arith.subf %237, %253 : vector<1x64xf32>
    %255 = vector.broadcast %252 : vector<1x64xf32> to vector<16x64xf32>
    %256 = arith.mulf %233, %255 : vector<16x64xf32>
    %257 = vector.broadcast %254 : vector<1x64xf32> to vector<16x64xf32>
    %258 = arith.addf %256, %257 : vector<16x64xf32>
    %259 = vector.extract_strided_slice %258 {offsets = [0, 0], sizes = [16, 32], strides = [1, 1]} : vector<16x64xf32> to vector<16x32xf32>
    %260 = vector.extract_strided_slice %258 {offsets = [0, 32], sizes = [16, 32], strides = [1, 1]} : vector<16x64xf32> to vector<16x32xf32>
    %c4 = arith.constant 4 : index
    %c0_128 = arith.constant 0 : index
    %c0_129 = arith.constant 0 : index
    %261 = vector.load %arg10[%c4, %c0_128, %c0_129] : memref<6x32x64xbf16, #tpu.memory_space<vmem>>, vector<1x32x64xbf16>
    %262 = vector.shape_cast %261 : vector<1x32x64xbf16> to vector<32x64xbf16>
    %cst_130 = arith.constant dense<0.000000e+00> : vector<16x64xf32>
    %263 = tpu.matmul %226, %262, %cst_130 {dimension_numbers = #tpu.dot_dimension_numbers<[1], [0], [0], [1], [0, 0, 1, 1], [], []>} : vector<16x32xbf16>, vector<32x64xbf16>, vector<16x64xf32> -> vector<16x64xf32>
    %c4_131 = arith.constant 4 : index
    %c0_132 = arith.constant 0 : index
    %c0_133 = arith.constant 0 : index
    %264 = vector.load %arg11[%c4_131, %c0_132, %c0_133] : memref<6x1x64xf32, #tpu.memory_space<vmem>>, vector<1x1x64xf32>
    %265 = vector.shape_cast %264 : vector<1x1x64xf32> to vector<1x64xf32>
    %266 = vector.broadcast %265 : vector<1x64xf32> to vector<16x64xf32>
    %267 = arith.addf %263, %266 : vector<16x64xf32>
    %c4_134 = arith.constant 4 : index
    %c0_135 = arith.constant 0 : index
    %c0_136 = arith.constant 0 : index
    %268 = vector.load %arg12[%c4_134, %c0_135, %c0_136] : memref<6x1x64xf32, #tpu.memory_space<vmem>>, vector<1x1x64xf32>
    %269 = vector.shape_cast %268 : vector<1x1x64xf32> to vector<1x64xf32>
    %c4_137 = arith.constant 4 : index
    %c0_138 = arith.constant 0 : index
    %c0_139 = arith.constant 0 : index
    %270 = vector.load %arg13[%c4_137, %c0_138, %c0_139] : memref<6x1x64xf32, #tpu.memory_space<vmem>>, vector<1x1x64xf32>
    %271 = vector.shape_cast %270 : vector<1x1x64xf32> to vector<1x64xf32>
    %cst_140 = arith.constant dense<0.000000e+00> : vector<64xf32>
    %272 = vector.multi_reduction <add>, %267, %cst_140 [0] : vector<16x64xf32> to vector<64xf32>
    %273 = vector.shape_cast %272 : vector<64xf32> to vector<1x64xf32>
    %cst_141 = arith.constant 1.600000e+01 : f32
    %274 = vector.broadcast %cst_141 : f32 to vector<1x64xf32>
    %275 = arith.divf %273, %274 : vector<1x64xf32>
    %276 = arith.mulf %267, %267 : vector<16x64xf32>
    %cst_142 = arith.constant dense<0.000000e+00> : vector<64xf32>
    %277 = vector.multi_reduction <add>, %276, %cst_142 [0] : vector<16x64xf32> to vector<64xf32>
    %278 = vector.shape_cast %277 : vector<64xf32> to vector<1x64xf32>
    %cst_143 = arith.constant 1.600000e+01 : f32
    %279 = vector.broadcast %cst_143 : f32 to vector<1x64xf32>
    %280 = arith.divf %278, %279 : vector<1x64xf32>
    %281 = arith.mulf %275, %275 : vector<1x64xf32>
    %282 = arith.subf %280, %281 : vector<1x64xf32>
    %cst_144 = arith.constant 9.99999974E-6 : f32
    %283 = vector.broadcast %cst_144 : f32 to vector<1x64xf32>
    %284 = arith.addf %282, %283 : vector<1x64xf32>
    %285 = math.rsqrt %284 : vector<1x64xf32>
    %286 = arith.mulf %269, %285 : vector<1x64xf32>
    %287 = arith.mulf %275, %286 : vector<1x64xf32>
    %288 = arith.subf %271, %287 : vector<1x64xf32>
    %289 = vector.broadcast %286 : vector<1x64xf32> to vector<16x64xf32>
    %290 = arith.mulf %267, %289 : vector<16x64xf32>
    %291 = vector.broadcast %288 : vector<1x64xf32> to vector<16x64xf32>
    %292 = arith.addf %290, %291 : vector<16x64xf32>
    %293 = vector.extract_strided_slice %292 {offsets = [0, 0], sizes = [16, 32], strides = [1, 1]} : vector<16x64xf32> to vector<16x32xf32>
    %294 = arith.addf %259, %293 : vector<16x32xf32>
    %295 = vector.extract_strided_slice %292 {offsets = [0, 32], sizes = [16, 32], strides = [1, 1]} : vector<16x64xf32> to vector<16x32xf32>
    %cst_145 = arith.constant 0.000000e+00 : f32
    %296 = vector.broadcast %cst_145 : f32 to vector<16x32xf32>
    %297 = arith.maximumf %294, %296 : vector<16x32xf32>
    %298 = arith.truncf %297 : vector<16x32xf32> to vector<16x32xbf16>
    %cst_146 = arith.constant dense<0.000000e+00> : vector<16x32xf32>
    %299 = tpu.matmul %0, %298, %cst_146 {dimension_numbers = #tpu.dot_dimension_numbers<[1], [0], [0], [1], [0, 0, 1, 1], [], []>} : vector<16x16xbf16>, vector<16x32xbf16>, vector<16x32xf32> -> vector<16x32xf32>
    %300 = arith.truncf %299 : vector<16x32xf32> to vector<16x32xbf16>
    %c5 = arith.constant 5 : index
    %c0_147 = arith.constant 0 : index
    %c0_148 = arith.constant 0 : index
    %301 = vector.load %arg10[%c5, %c0_147, %c0_148] : memref<6x32x64xbf16, #tpu.memory_space<vmem>>, vector<1x32x64xbf16>
    %302 = vector.shape_cast %301 : vector<1x32x64xbf16> to vector<32x64xbf16>
    %cst_149 = arith.constant dense<0.000000e+00> : vector<16x64xf32>
    %303 = tpu.matmul %300, %302, %cst_149 {dimension_numbers = #tpu.dot_dimension_numbers<[1], [0], [0], [1], [0, 0, 1, 1], [], []>} : vector<16x32xbf16>, vector<32x64xbf16>, vector<16x64xf32> -> vector<16x64xf32>
    %c5_150 = arith.constant 5 : index
    %c0_151 = arith.constant 0 : index
    %c0_152 = arith.constant 0 : index
    %304 = vector.load %arg11[%c5_150, %c0_151, %c0_152] : memref<6x1x64xf32, #tpu.memory_space<vmem>>, vector<1x1x64xf32>
    %305 = vector.shape_cast %304 : vector<1x1x64xf32> to vector<1x64xf32>
    %306 = vector.broadcast %305 : vector<1x64xf32> to vector<16x64xf32>
    %307 = arith.addf %303, %306 : vector<16x64xf32>
    %c5_153 = arith.constant 5 : index
    %c0_154 = arith.constant 0 : index
    %c0_155 = arith.constant 0 : index
    %308 = vector.load %arg12[%c5_153, %c0_154, %c0_155] : memref<6x1x64xf32, #tpu.memory_space<vmem>>, vector<1x1x64xf32>
    %309 = vector.shape_cast %308 : vector<1x1x64xf32> to vector<1x64xf32>
    %c5_156 = arith.constant 5 : index
    %c0_157 = arith.constant 0 : index
    %c0_158 = arith.constant 0 : index
    %310 = vector.load %arg13[%c5_156, %c0_157, %c0_158] : memref<6x1x64xf32, #tpu.memory_space<vmem>>, vector<1x1x64xf32>
    %311 = vector.shape_cast %310 : vector<1x1x64xf32> to vector<1x64xf32>
    %cst_159 = arith.constant dense<0.000000e+00> : vector<64xf32>
    %312 = vector.multi_reduction <add>, %307, %cst_159 [0] : vector<16x64xf32> to vector<64xf32>
    %313 = vector.shape_cast %312 : vector<64xf32> to vector<1x64xf32>
    %cst_160 = arith.constant 1.600000e+01 : f32
    %314 = vector.broadcast %cst_160 : f32 to vector<1x64xf32>
    %315 = arith.divf %313, %314 : vector<1x64xf32>
    %316 = arith.mulf %307, %307 : vector<16x64xf32>
    %cst_161 = arith.constant dense<0.000000e+00> : vector<64xf32>
    %317 = vector.multi_reduction <add>, %316, %cst_161 [0] : vector<16x64xf32> to vector<64xf32>
    %318 = vector.shape_cast %317 : vector<64xf32> to vector<1x64xf32>
    %cst_162 = arith.constant 1.600000e+01 : f32
    %319 = vector.broadcast %cst_162 : f32 to vector<1x64xf32>
    %320 = arith.divf %318, %319 : vector<1x64xf32>
    %321 = arith.mulf %315, %315 : vector<1x64xf32>
    %322 = arith.subf %320, %321 : vector<1x64xf32>
    %cst_163 = arith.constant 9.99999974E-6 : f32
    %323 = vector.broadcast %cst_163 : f32 to vector<1x64xf32>
    %324 = arith.addf %322, %323 : vector<1x64xf32>
    %325 = math.rsqrt %324 : vector<1x64xf32>
    %326 = arith.mulf %309, %325 : vector<1x64xf32>
    %327 = arith.mulf %315, %326 : vector<1x64xf32>
    %328 = arith.subf %311, %327 : vector<1x64xf32>
    %329 = vector.broadcast %326 : vector<1x64xf32> to vector<16x64xf32>
    %330 = arith.mulf %307, %329 : vector<16x64xf32>
    %331 = vector.broadcast %328 : vector<1x64xf32> to vector<16x64xf32>
    %332 = arith.addf %330, %331 : vector<16x64xf32>
    %333 = vector.extract_strided_slice %332 {offsets = [0, 0], sizes = [16, 32], strides = [1, 1]} : vector<16x64xf32> to vector<16x32xf32>
    %334 = arith.addf %260, %333 : vector<16x32xf32>
    %335 = vector.extract_strided_slice %332 {offsets = [0, 32], sizes = [16, 32], strides = [1, 1]} : vector<16x64xf32> to vector<16x32xf32>
    %336 = arith.addf %295, %335 : vector<16x32xf32>
    %337 = tpu.concatenate %294, %334, %336 in 1 : vector<16x32xf32>, vector<16x32xf32>, vector<16x32xf32> -> vector<16x96xf32>
    %338 = arith.truncf %337 : vector<16x96xf32> to vector<16x96xbf16>
    %c0_164 = arith.constant 0 : index
    %c0_165 = arith.constant 0 : index
    %339 = vector.load %arg14[%c0_164, %c0_165] : memref<96x128xbf16, #tpu.memory_space<vmem>>, vector<96x128xbf16>
    %cst_166 = arith.constant dense<0.000000e+00> : vector<16x128xf32>
    %340 = tpu.matmul %338, %339, %cst_166 {dimension_numbers = #tpu.dot_dimension_numbers<[1], [0], [0], [1], [0, 0, 1, 1], [], []>} : vector<16x96xbf16>, vector<96x128xbf16>, vector<16x128xf32> -> vector<16x128xf32>
    %c0_167 = arith.constant 0 : index
    %c0_168 = arith.constant 0 : index
    %341 = vector.load %arg15[%c0_167, %c0_168] : memref<1x128xf32, #tpu.memory_space<vmem>>, vector<1x128xf32>
    %342 = vector.broadcast %341 : vector<1x128xf32> to vector<16x128xf32>
    %343 = arith.addf %340, %342 : vector<16x128xf32>
    %c0_169 = arith.constant 0 : index
    %c0_170 = arith.constant 0 : index
    %344 = vector.load %arg16[%c0_169, %c0_170] : memref<16x128xf32, #tpu.memory_space<vmem>>, vector<16x128xf32>
    tpu.vector_store %arg16[%c0_169, %c0_170], %343 {strides = array<i32>} : memref<16x128xf32, #tpu.memory_space<vmem>>, vector<16x128xf32>,
    return
  }
}

</mosaic_0001>

<bundles_post_ra>
// kernel: tpu_custom_call.1
= control target key start
LH: loop header
LB: loop body
LE: loop exit
PB: predicated region body
PF: predicated region fallthrough
CT: control target
= control target key end

     0   :  { %s2347_s0 = inlined_call_operand.vmem [shape: f32[16,16], index: 0, kind: input, shape index: {}]   ;;  %s2348_s1 = inlined_call_operand.vmem [shape: bf16[16,16], index: 1, kind: input, shape index: {}]   ;;  %s2349_s2 = inlined_call_operand.hbm [shape: bf16[16,96], index: 2, kind: input, shape index: {}]   ;;  %s2350_s3 = inlined_call_operand.vmem [shape: f32[1,96], index: 3, kind: input, shape index: {}]   ;;  %s2351_s4 = inlined_call_operand.hbm [shape: f32[1,96], index: 4, kind: input, shape index: {}]   ;;  %s2352_s5 = inlined_call_operand.hbm [shape: f32[1,96], index: 5, kind: input, shape index: {}]   ;;  %s2353_s6 = inlined_call_operand.vmem [shape: bf16[2,96,64], index: 6, kind: input, shape index: {}]   ;;  %s2354_s7 = inlined_call_operand.hbm [shape: f32[2,1,64], index: 7, kind: input, shape index: {}]   ;;  %s2355_s8 = inlined_call_operand.hbm [shape: f32[2,1,64], index: 8, kind: input, shape index: {}]   ;;  %s2356_s9 = inlined_call_operand.hbm [shape: f32[2,1,64], index: 9, kind: input, shape index: {}]   ;;  %s2357_s10 = inlined_call_operand.vmem [shape: bf16[6,32,64], index: 10, kind: input, shape index: {}]   ;;  %s2358_s11 = inlined_call_operand.hbm [shape: f32[6,1,64], index: 11, kind: input, shape index: {}]   ;;  %s2359_s12 = inlined_call_operand.hbm [shape: f32[6,1,64], index: 12, kind: input, shape index: {}]   ;;  %s2360_s13 = inlined_call_operand.hbm [shape: f32[6,1,64], index: 13, kind: input, shape index: {}]   ;;  %s2361_s14 = inlined_call_operand.vmem [shape: bf16[96,128], index: 14, kind: input, shape index: {}]   ;;  %s2362_s15 = inlined_call_operand.vmem [shape: f32[1,128], index: 15, kind: input, shape index: {}]   ;;  %s2363_s16 = inlined_call_operand.hbm [shape: f32[16,128], index: 16, kind: output, shape index: {}]  }
   0x1   :  { %2365 = sst [smem:[#allocation24_spill]] %s2347_s0 }
   0x2   :  { %21 = vsyncpa [#allocation3], 0 }
   0x3   :  { %22 = vsyncpa [#allocation6], 0 }
   0x4   :  { %23 = vsyncpa [#allocation9], 0 }
   0x5   :  { %24 = vsyncpa [#allocation12], 0 }
   0x6   :  { %25 = vsyncpa [#allocation15], 0  ;;  %s51_s23 = sshll.u32 %s2351_s4, 4  ;;  %s52_s23 = int_to_ptr.hbm [resolvable:$true] %s51_s23 }
   0x7   :  { %26 = vsyncpa [#allocation4], 0  ;;  %s1877_s24 = smov [#allocation5]   ;;  %s74_s28 = sshll.u32 %s2354_s7, 4  ;;  %s75_s28 = int_to_ptr.hbm [resolvable:$true] %s74_s28 }
   0x8   :  { %s53_s25 = sshll.u32 %s1877_s24, 4  ;;  %s1878_s29 = smov [#allocation8]   ;;  %s54_s25 = int_to_ptr.vmem [resolvable:$true] %s53_s25 }
   0x9   :  { %56 = dma.hbm_to_vmem [thread:$0]  %s52_s23, 16, %s54_s25, [#allocation6]  }
   0xa   :  { %s76_s30 = sshll.u32 %s1878_s29, 4  ;;  %s1879_s0 = smov 16   ;;  %s77_s30 = int_to_ptr.vmem [resolvable:$true] %s76_s30 }
   0xb   :  { %s1880_s17 = smov 1   ;;  %s100_s19 = sshll.u32 %s2356_s9, 4  ;;  %s101_s19 = int_to_ptr.hbm [resolvable:$true] %s100_s19 }
   0xc   :  { %82 = dma.hbm_to_vmem [thread:$0]  %s75_s28, 32, %s77_s30, [#allocation9], %s1879_s0, %s1879_s0, %s1880_s17  }
   0xd   :  { %s1881_s20 = smov [#allocation11]   ;;  %s128_s23 = sshll.u32 %s2359_s12, 4  ;;  %s129_s23 = int_to_ptr.hbm [resolvable:$true] %s128_s23 }
   0xe   :  { %s102_s21 = sshll.u32 %s1881_s20, 4  ;;  %s1882_s24 = smov [#allocation14]   ;;  %s103_s21 = int_to_ptr.vmem [resolvable:$true] %s102_s21 }
   0xf   :  { %108 = dma.hbm_to_vmem [thread:$0]  %s101_s19, 32, %s103_s21, [#allocation12], %s1879_s0, %s1879_s0, %s1880_s17  }
  0x10   :  { %s130_s25 = sshll.u32 %s1882_s24, 4  ;;  %s35_s28 = sshll.u32 %s2349_s2, 4  ;;  %s131_s25 = int_to_ptr.vmem [resolvable:$true] %s130_s25  ;;  %s36_s28 = int_to_ptr.hbm [resolvable:$true] %s35_s28 }
  0x11   :  { %136 = dma.hbm_to_vmem [thread:$0]  %s129_s23, 96, %s131_s25, [#allocation15], %s1879_s0, %s1879_s0, %s1880_s17  }
  0x12   :  { %s1883_s9 = smov [#allocation2]   ;;  %s62_s4 = sshll.u32 %s2352_s5, 4  ;;  %s63_s4 = int_to_ptr.hbm [resolvable:$true] %s62_s4 }
  0x13   :  { %s37_s29 = sshll.u32 %s1883_s9, 4  ;;  %s1884_s18 = smov 64   ;;  %s38_s29 = int_to_ptr.vmem [resolvable:$true] %s37_s29 }
  0x14   :  { %s1885_s19 = smov 4   ;;  %s1886_s20 = smov [#allocation7]  }
  0x15   :  { %43 = dma.hbm_to_vmem [thread:$0]  %s36_s28, 128, %s38_s29, [#allocation3], %s1884_s18, %s1884_s18, %s1885_s19  }
  0x16   :  { %s64_s21 = sshll.u32 %s1886_s20, 4  ;;  %s87_s22 = sshll.u32 %s2355_s8, 4  ;;  %s65_s21 = int_to_ptr.vmem [resolvable:$true] %s64_s21  ;;  %s88_s22 = int_to_ptr.hbm [resolvable:$true] %s87_s22 }
  0x17   :  { %67 = dma.hbm_to_vmem [thread:$0]  %s63_s4, 16, %s65_s21, [#allocation6]  }
  0x18   :  { %s115_s25 = sshll.u32 %s2358_s11, 4  ;;  %s1887_s26 = smov [#allocation10]   ;;  %s116_s25 = int_to_ptr.hbm [resolvable:$true] %s115_s25 }
  0x19   :  { %s89_s27 = sshll.u32 %s1887_s26, 4  ;;  %s1888_s5 = smov [#allocation13]   ;;  %s90_s27 = int_to_ptr.vmem [resolvable:$true] %s89_s27 }
  0x1a   :  { %95 = dma.hbm_to_vmem [thread:$0]  %s88_s22, 32, %s90_s27, [#allocation9], %s1879_s0, %s1879_s0, %s1880_s17  }
  0x1b   :  { %s117_s28 = sshll.u32 %s1888_s5, 4  ;;  %s141_s8 = sshll.u32 %s2360_s13, 4  ;;  %s118_s28 = int_to_ptr.vmem [resolvable:$true] %s117_s28  ;;  %s142_s8 = int_to_ptr.hbm [resolvable:$true] %s141_s8 }
  0x1c   :  { %123 = dma.hbm_to_vmem [thread:$0]  %s116_s25, 96, %s118_s28, [#allocation12], %s1879_s0, %s1879_s0, %s1880_s17  }
  0x1d   :  { %s1889_s11 = smov [#allocation16]  }
  0x1e   :  { %s143_s12 = sshll.u32 %s1889_s11, 4  ;;  %s144_s12 = int_to_ptr.vmem [resolvable:$true] %s143_s12 }
  0x1f   :  { %149 = dma.hbm_to_vmem [thread:$0]  %s142_s8, 96, %s144_s12, [#allocation15], %s1879_s0, %s1879_s0, %s1880_s17  }
  0x20   :  { %1865 = dma.done.wait [#allocation3], 128  }
  0x21   :  { %1866 = vsyncadd [#allocation3], 4294967168 }
  0x22   :  { %1867 = dma.done.wait [#allocation6], 32  }
  0x23   :  { %1868 = vsyncadd [#allocation6], 4294967264 }
  0x24   :  { %1869 = dma.done.wait [#allocation9], 64  }
  0x25   :  { %1870 = vsyncadd [#allocation9], 4294967232 }
  0x26   :  { %1871 = dma.done.wait [#allocation12], 128  }
  0x27   :  { %1872 = vsyncadd [#allocation12], 4294967168 }
  0x28   :  { %1873 = dma.done.wait [#allocation15], 192  }
  0x29   :  { %1874 = vsyncadd [#allocation15], 4294967104  ;;  %v1535_v0 = vld [vmem:[#allocation2] sm:$0xff]  ;;  %s2366_s4 = sld [smem:[#allocation24_spill]]  ;;  %vm208_vm0 = vcmask 130048   ;;  %v1890_v4 = vmov 16.0  }
  0x2a   :  { %219 = vmatpush.bf16.msra.mxu0 %v1535_v0  ;;  %1605 = vrcp.f32 %v1890_v4  ;;  %v1595_v6 = vld [vmem:[%s2350_s3] ss:$0 sm:$0xff]  ;;  %v1541_v10 = vld [vmem:[%s2353_s6 + $0x28] sm:$0xff]  ;;  %vm228_vm1 = vcmask 785408   ;;  %v1539_v25 = vld [vmem:[%s2353_s6 + $0x18] sm:$0xff]  ;;  %vm356_vm6 = vcmask 523264  }
  0x2b   :  { %342 = vmatpush.bf16.msra.mxu1 %v1541_v10  ;;  %v1540_v18 = vld [vmem:[%s2353_s6 + $0x20] sm:$0xff]  ;;  %v1538_v31 = vld [vmem:[%s2353_s6 + $0x10] sm:$0xff]  ;;  %v1537_v37 = vld [vmem:[%s2353_s6 + $0x8] sm:$0xff]  ;;  %s1891_s20 = smov 96   ;;  %vm457_vm10 = vcmask 261120   ;;  %s1892_s28 = smov 32  }
  0x2c   :  { %v1536_v40 = vld [vmem:[%s2353_s6] sm:$0xff]  ;;  %v226_v52 = vld [vmem:[#allocation5] sm:$0x1]  ;;  %v227_v56 = vld [vmem:[#allocation7] sm:$0x1]  ;;  %s1893_s27 = smov [#allocation17]  }
  0x2d   :  { %s1340_s5 = sshll.u32 %s1893_s27, 4  ;;  %s1342_s29 = sshll.u32 %s2363_s16, 4  ;;  %s1341_s5 = int_to_ptr.vmem [resolvable:$true] %s1340_s5  ;;  %s1343_s29 = int_to_ptr.hbm [resolvable:$true] %s1342_s29 }
  0x2e   :  { %s1894_s8 = smov 128   ;;  %s1895_s11 = smov 8  }
  0x2f   :  { %v193_v1 = vld [vmem:[%s2366_s4] sm:$0xff]  ;;  %v194_v2 = vld [vmem:[%s2366_s4 + $0x8] sm:$0xff]  ;;  %343 = vmatpush.bf16.msra.mxu1 %v1540_v18 }
  0x30   :  { %v195_v3 = vpack.c.bf16 %v194_v2, %v193_v1  ;;  %v1606_v7 = vpop.eup %1605 }
  0x31   :  { %v239_v9 = vmul.f32 16.0, %v1606_v7  ;;  %vm243_vm2 = vweird.f32 %v1606_v7 }
  0x32   :  { %1363 = vmatmul.msk.bf16.vlgmr.msra.gmra.mxu0 %vm208_vm0, %v195_v3  ;;  %v1596_v3 = vld [vmem:[#allocation8] ss:$0 sm:$0xff] }
  0x33   :  { %v240_v16 = vsub.f32 1.0, %v239_v9  ;;  %344 = vmatpush.bf16.msra.mxu1 %v1539_v25 }
  0x35   :  { %v241_v24 = vmul.f32 %v1606_v7, %v240_v16 }
  0x37   :  { %v242_v30 = vadd.f32 %v1606_v7, %v241_v24  ;;  %345 = vmatpush.bf16.msra.mxu1 %v1538_v31 }
  0x39   :  { %v2057_v36 = vsel %vm243_vm2, %v1606_v7, %v242_v30 }
  0x3b   :  { %346 = vmatpush.bf16.msra.mxu1 %v1537_v37 }
  0x3f   :  { %347 = vmatpush.bf16.msra.mxu1 %v1536_v40 }
  0xaf   :  { %v221_v5 = vpop.f32.mrf.mxu0 }
  0xb0   :  { %v2036_v8 = vadd.f32 %v1595_v6, %v221_v5 }
  0xb2   :  { %v246_v12 = vmul.f32 %v2036_v8, %v2036_v8  ;;  %v229_v14 = vsel %vm228_vm1, %v2036_v8, 0.0 }
  0xb4   :  { %v248_v20 = vsel %vm228_vm1, %v246_v12, 0.0 }
  0xb7   :  { %v223_v11 = vpop.f32.mrf.mxu0 }
  0xb8   :  { %v224_v13 = vadd.f32 %v1595_v6, %v223_v11 }
  0xba   :  { %v230_v15 = vsel %vm228_vm1, %v224_v13, 0.0  ;;  %v247_v17 = vmul.f32 %v224_v13, %v224_v13 }
  0xbb   :  { %v231_v19 = vadd.f32 %v230_v15, %v229_v14 }
  0xbc   :  { %v249_v21 = vsel %vm228_vm1, %v247_v17, 0.0 }
  0xbd   :  { %v232_v22 = vrot.slane %v231_v19, 4  ;;  %v250_v23 = vadd.f32 %v249_v21, %v248_v20 }
  0xbf   :  { %v233_v26 = vadd.f32 %v232_v22, %v231_v19  ;;  %v251_v27 = vrot.slane %v250_v23, 4 }
  0xc1   :  { %v234_v28 = vrot.slane %v233_v26, 2  ;;  %v252_v29 = vadd.f32 %v251_v27, %v250_v23 }
  0xc3   :  { %v235_v32 = vadd.f32 %v234_v28, %v233_v26  ;;  %v253_v33 = vrot.slane %v252_v29, 2 }
  0xc5   :  { %v236_v34 = vrot.slane %v235_v32, 1  ;;  %v254_v35 = vadd.f32 %v253_v33, %v252_v29 }
  0xc7   :  { %v237_v38 = vadd.f32 %v236_v34, %v235_v32  ;;  %v255_v39 = vrot.slane %v254_v35, 1 }
  0xc9   :  { %v245_v41 = vmul.f32 %v2057_v36, %v237_v38  ;;  %v256_v42 = vadd.f32 %v255_v39, %v254_v35  ;;  %v354_v38 = vld [vmem:[#allocation10] sm:$0x1] }
  0xcb   :  { %v257_v43 = vmul.f32 %v256_v42, %v2057_v36  ;;  %v258_v44 = vmul.f32 %v245_v41, %v245_v41  ;;  %v355_v42 = vld [vmem:[#allocation11] sm:$0x1] }
  0xcd   :  { %v259_v45 = vsub.f32 %v257_v43, %v258_v44 }
  0xcf   :  { %v260_v46 = vadd.f32 1e-05, %v259_v45 }
  0xd1   :  { %1607 = vrsqrt.f32 %v260_v46  ;;  %vm267_vm4 = vweird.f32 %v260_v46 }
  0xd7   :  { %v1608_v47 = vpop.eup %1607 }
  0xd8   :  { %v262_v48 = vmul.f32 %v1608_v47, %v260_v46  ;;  %vm268_vm3 = vweird.f32 %v1608_v47 }
  0xd9   :  { %vm269_vm5 = vmor %vm267_vm4, %vm268_vm3 }
  0xda   :  { %v263_v49 = vmul.f32 %v1608_v47, %v262_v48 }
  0xdc   :  { %v264_v50 = vmul.f32 0.5, %v263_v49 }
  0xde   :  { %v265_v51 = vsub.f32 1.5, %v264_v50 }
  0xe0   :  { %v266_v53 = vmul.f32 %v1608_v47, %v265_v51 }
  0xe2   :  { %v270_v54 = vsel %vm269_vm5, %v1608_v47, %v266_v53 }
  0xe3   :  { %v271_v55 = vmul.f32 %v270_v54, %v226_v52  ;;  %v2081_v54 = vld [vmem:[%s2348_s1] sm:$0xff] }
  0xe5   :  { %v275_v57 = vperm.slane %v271_v55, 0  ;;  %v272_v58 = vmul.f32 %v271_v55, %v245_v41  ;;  %v1543_v55 = vld [vmem:[%s2357_s10 + $0x8] sm:$0xff] }
  0xe6   :  { %467 = vmatpush.bf16.msra.mxu3 %v1543_v55 }
  0xe7   :  { %v273_v59 = vsub.f32 %v227_v56, %v272_v58  ;;  %v278_v60 = vmul.f32 %v275_v57, %v224_v13  ;;  %v277_v61 = vmul.f32 %v275_v57, %v2036_v8  ;;  %v1542_v56 = vld [vmem:[%s2357_s10] sm:$0xff]  ;;  %v1545_v57 = vld [vmem:[%s2357_s10 + $0x18] sm:$0xff]  ;;  %v1552_v58 = vld [vmem:[%s2353_s6 + $0x50] sm:$0xff] }
  0xe8   :  { %558 = vmatpush.bf16.msrb.mxu0 %v1545_v57  ;;  %825 = vrot.lane.b32.xlu1 %v1552_v58, %s1891_s20 }
  0xe9   :  { %v280_v62 = vperm.slane %v273_v59, 0  ;;  %v1544_v59 = vld [vmem:[%s2357_s10 + $0x10] sm:$0xff] }
  0xea   :  { %468 = vmatpush.bf16.msra.mxu3 %v1542_v56 }
  0xeb   :  { %v282_v63 = vadd.f32 %v280_v62, %v277_v61  ;;  %v283_v0 = vadd.f32 %v280_v62, %v278_v60  ;;  %v1553_v60 = vld [vmem:[%s2353_s6 + $0x58] sm:$0xff] }
  0xec   :  { %559 = vmatpush.bf16.msrb.mxu0 %v1544_v59 }
  0xed   :  { %v2068_v1 = vpack.c.bf16 %v283_v0, %v282_v63 }
  0xef   :  { %1388 = vmatmul.msk.bf16.vlgmr.msra.gmra.mxu1 %vm228_vm1, %v2068_v1 }
  0xf0   :  { %805 = vmatpush.bf16.msra.mxu0 %v1553_v60 }
  0xf4   :  { %806 = vmatpush.bf16.msra.mxu0 %v1552_v58 }
 0x16c   :  { %v349_v2 = vpop.f32.mrf.mxu1 }
 0x16d   :  { %v350_v4 = vadd.f32 %v1596_v3, %v349_v2 }
 0x16f   :  { %v367_v6 = vmul.f32 %v350_v4, %v350_v4  ;;  %v357_v9 = vsel %vm356_vm6, %v350_v4, 0.0 }
 0x171   :  { %v369_v12 = vsel %vm356_vm6, %v367_v6, 0.0  ;;  %v1550_v6 = vld [vmem:[%s2353_s6 + $0x40] sm:$0xff] }
 0x172   :  { %821 = vrot.lane.b32.xlu2 %v1550_v6, %s1891_s20 }
 0x174   :  { %v351_v5 = vpop.f32.mrf.mxu1 }
 0x175   :  { %v352_v7 = vadd.f32 %v1596_v3, %v351_v5  ;;  %v1551_v5 = vld [vmem:[%s2353_s6 + $0x48] sm:$0xff] }
 0x176   :  { %807 = vmatpush.bf16.msra.mxu0 %v1551_v5  ;;  %823 = vrot.lane.b32.xlu1 %v1551_v5, %s1891_s20 }
 0x177   :  { %v358_v10 = vsel %vm356_vm6, %v352_v7, 0.0  ;;  %v368_v8 = vmul.f32 %v352_v7, %v352_v7 }
 0x178   :  { %v359_v11 = vadd.f32 %v358_v10, %v357_v9  ;;  %v2121_v9 = vld [vmem:[%s2353_s6 + $0x30] sm:$0xff] }
 0x179   :  { %v370_v13 = vsel %vm356_vm6, %v368_v8, 0.0 }
 0x17a   :  { %v360_v14 = vrot.slane %v359_v11, 4  ;;  %v371_v15 = vadd.f32 %v370_v13, %v369_v12  ;;  %808 = vmatpush.bf16.msra.mxu0 %v1550_v6  ;;  %v1597_v12 = vld [vmem:[#allocation13] ss:$0 sm:$0xff] }
 0x17c   :  { %v361_v16 = vadd.f32 %v360_v14, %v359_v11  ;;  %v372_v17 = vrot.slane %v371_v15, 4 }
 0x17e   :  { %v362_v18 = vrot.slane %v361_v16, 2  ;;  %v373_v19 = vadd.f32 %v372_v17, %v371_v15 }
 0x180   :  { %v363_v20 = vadd.f32 %v362_v18, %v361_v16  ;;  %v374_v21 = vrot.slane %v373_v19, 2 }
 0x182   :  { %v364_v22 = vrot.slane %v363_v20, 1  ;;  %v375_v23 = vadd.f32 %v374_v21, %v373_v19 }
 0x184   :  { %v376_v24 = vrot.slane %v375_v23, 1  ;;  %v365_v25 = vadd.f32 %v364_v22, %v363_v20 }
 0x186   :  { %v377_v26 = vadd.f32 %v376_v24, %v375_v23  ;;  %v366_v27 = vmul.f32 %v365_v25, %v2057_v36 }
 0x188   :  { %v378_v28 = vmul.f32 %v377_v26, %v2057_v36  ;;  %v379_v29 = vmul.f32 %v366_v27, %v366_v27 }
 0x18a   :  { %v380_v30 = vsub.f32 %v378_v28, %v379_v29 }
 0x18c   :  { %v381_v31 = vadd.f32 1e-05, %v380_v30 }
 0x18e   :  { %1609 = vrsqrt.f32 %v381_v31  ;;  %vm388_vm8 = vweird.f32 %v381_v31 }
 0x194   :  { %v1610_v32 = vpop.eup %1609 }
 0x195   :  { %v383_v33 = vmul.f32 %v1610_v32, %v381_v31  ;;  %vm389_vm7 = vweird.f32 %v1610_v32 }
 0x196   :  { %vm390_vm9 = vmor %vm388_vm8, %vm389_vm7 }
 0x197   :  { %v384_v34 = vmul.f32 %v1610_v32, %v383_v33 }
 0x199   :  { %v385_v35 = vmul.f32 0.5, %v384_v34 }
 0x19b   :  { %v386_v37 = vsub.f32 1.5, %v385_v35 }
 0x19d   :  { %v387_v39 = vmul.f32 %v1610_v32, %v386_v37 }
 0x19f   :  { %v391_v40 = vsel %vm390_vm9, %v1610_v32, %v387_v39  ;;  %v1598_v39 = vld [vmem:[#allocation13 + $0x1] ss:$0 sm:$0xff] }
 0x1a0   :  { %v392_v41 = vmul.f32 %v391_v40, %v354_v38 }
 0x1a2   :  { %v393_v43 = vmul.f32 %v392_v41, %v366_v27  ;;  %v396_v44 = vperm.slane %v392_v41, 0 }
 0x1a4   :  { %v394_v45 = vsub.f32 %v355_v42, %v393_v43  ;;  %v398_v46 = vmul.f32 %v396_v44, %v350_v4  ;;  %v399_v47 = vmul.f32 %v396_v44, %v352_v7  ;;  %v1549_v7 = vld [vmem:[%s2353_s6 + $0x38] sm:$0xff] }
 0x1a5   :  { %809 = vmatpush.bf16.msra.mxu0 %v1549_v7  ;;  %819 = vrot.lane.b32.xlu2 %v1549_v7, %s1891_s20 }
 0x1a6   :  { %v401_v48 = vperm.slane %v394_v45, 0 }
 0x1a8   :  { %v403_v49 = vadd.f32 %v401_v48, %v398_v46  ;;  %v404_v50 = vadd.f32 %v401_v48, %v399_v47 }
 0x1a9   :  { %810 = vmatpush.bf16.msra.mxu0 %v2121_v9 }
 0x1aa   :  { %v405_v51 = vmax.f32 %v403_v49, 0.0  ;;  %v406_v52 = vmax.f32 %v404_v50, 0.0 }
 0x1ac   :  { %v407_v53 = vpack.c.bf16 %v406_v52, %v405_v51 }
 0x1ae   :  { %423 = vmatpush.bf16.msra.mxu2 %v407_v53 }
 0x1b1   :  { %1393 = vmatmul.msk.bf16.vlgmr.msra.gmra.mxu2 %vm208_vm0, %v2081_v54 }
 0x234   :  { %v425_v61 = vpop.f32.mrf.mxu2 }
 0x235   :  { %v430_v62 = vpack.c.bf16 %v425_v61, %v425_v61 }
 0x237   :  { %v442_v2 = vunpack.c.l.b16 %v430_v62 }
 0x23c   :  { %v427_v63 = vpop.f32.mrf.mxu2 }
 0x23d   :  { %v431_v0 = vpack.c.bf16 %v427_v63, %v427_v63 }
 0x23f   :  { %v443_v3 = vunpack.c.l.b16 %v431_v0 }
 0x241   :  { %v444_v4 = vpack.c.b16 %v443_v3, %v442_v2 }
 0x243   :  { %535 = vrot.lane.b32.xlu0 %v444_v4, %s1891_s20  ;;  %1402 = vmatmul.msk.bf16.vlgmr.msra.gmra.mxu3 %vm457_vm10, %v444_v4 }
 0x24b   :  { %827 = vrot.lane.b32.xlu0 %v1553_v60, %s1891_s20 }
 0x2b5   :  { %v536_v10 = vpop.permute.xlu0 %535 }
 0x2b6   :  { %1415 = vmatmul.msk.bf16.vlgmr.msrb.gmra.mxu0 %vm457_vm10, %v536_v10 }
 0x2c6   :  { %1466 = vmatmul.msk.bf16.vlgmr.msra.gmra.mxu0 %vm228_vm1, %v2068_v1  ;;  %v470_v8 = vpop.f32.mrf.mxu3 }
 0x2c7   :  { %v2130_v14 = vadd.f32 %v1597_v12, %v470_v8 }
 0x2c9   :  { %v477_v17 = vsel %vm356_vm6, %v2130_v14, 0.0  ;;  %v487_v18 = vmul.f32 %v2130_v14, %v2130_v14 }
 0x2cb   :  { %v489_v20 = vsel %vm356_vm6, %v487_v18, 0.0  ;;  %v475_v18 = vld [vmem:[#allocation14] sm:$0x1] }
 0x2ce   :  { %v472_v11 = vpop.f32.mrf.mxu3 }
 0x2cf   :  { %v2128_v13 = vadd.f32 %v1597_v12, %v472_v11 }
 0x2d1   :  { %v478_v15 = vsel %vm356_vm6, %v2128_v13, 0.0  ;;  %v488_v16 = vmul.f32 %v2128_v13, %v2128_v13 }
 0x2d2   :  { %v479_v1 = vadd.f32 %v478_v15, %v477_v17 }
 0x2d3   :  { %v490_v19 = vsel %vm356_vm6, %v488_v16, 0.0 }
 0x2d4   :  { %v480_v21 = vrot.slane %v479_v1, 4  ;;  %v491_v22 = vadd.f32 %v490_v19, %v489_v20 }
 0x2d6   :  { %v481_v23 = vadd.f32 %v480_v21, %v479_v1  ;;  %v492_v24 = vrot.slane %v491_v22, 4 }
 0x2d8   :  { %v482_v25 = vrot.slane %v481_v23, 2  ;;  %v493_v26 = vadd.f32 %v492_v24, %v491_v22 }
 0x2da   :  { %v483_v27 = vadd.f32 %v482_v25, %v481_v23  ;;  %v494_v28 = vrot.slane %v493_v26, 2  ;;  %v476_v25 = vld [vmem:[#allocation16] sm:$0x1] }
 0x2dc   :  { %v484_v29 = vrot.slane %v483_v27, 1  ;;  %v495_v30 = vadd.f32 %v494_v28, %v493_v26  ;;  %v567_v26 = vld [vmem:[#allocation14 + $0x1] sm:$0x1] }
 0x2de   :  { %v485_v31 = vadd.f32 %v484_v29, %v483_v27  ;;  %v496_v32 = vrot.slane %v495_v30, 1 }
 0x2e0   :  { %v486_v33 = vmul.f32 %v485_v31, %v2057_v36  ;;  %v497_v34 = vadd.f32 %v496_v32, %v495_v30  ;;  %v569_v32 = vld [vmem:[#allocation16 + $0x1] sm:$0x1] }
 0x2e2   :  { %v498_v35 = vmul.f32 %v497_v34, %v2057_v36  ;;  %v499_v37 = vmul.f32 %v486_v33, %v486_v33 }
 0x2e4   :  { %v500_v40 = vsub.f32 %v498_v35, %v499_v37 }
 0x2e6   :  { %v501_v42 = vadd.f32 1e-05, %v500_v40 }
 0x2e8   :  { %1611 = vrsqrt.f32 %v501_v42  ;;  %vm508_vm12 = vweird.f32 %v501_v42 }
 0x2ee   :  { %v1612_v57 = vpop.eup %1611 }
 0x2ef   :  { %v503_v62 = vmul.f32 %v1612_v57, %v501_v42  ;;  %vm509_vm11 = vweird.f32 %v1612_v57 }
 0x2f0   :  { %vm510_vm13 = vmor %vm508_vm12, %vm509_vm11 }
 0x2f1   :  { %v504_v4 = vmul.f32 %v1612_v57, %v503_v62 }
 0x2f3   :  { %v505_v8 = vmul.f32 0.5, %v504_v4 }
 0x2f5   :  { %v506_v15 = vsub.f32 1.5, %v505_v8 }
 0x2f7   :  { %v507_v16 = vmul.f32 %v1612_v57, %v506_v15 }
 0x2f9   :  { %v511_v1 = vsel %vm510_vm13, %v1612_v57, %v507_v16  ;;  %v1599_v57 = vld [vmem:[#allocation13 + $0x2] ss:$0 sm:$0xff] }
 0x2fa   :  { %v512_v21 = vmul.f32 %v511_v1, %v475_v18 }
 0x2fc   :  { %v513_v24 = vmul.f32 %v512_v21, %v486_v33  ;;  %v516_v31 = vperm.slane %v512_v21, 0 }
 0x2fe   :  { %v514_v29 = vsub.f32 %v476_v25, %v513_v24  ;;  %v519_v40 = vmul.f32 %v516_v31, %v2128_v13  ;;  %v828_v25 = vpop.permute.xlu0 %827 }
 0x300   :  { %v521_v37 = vperm.slane %v514_v29, 0  ;;  %v826_v29 = vpop.permute.xlu1 %825 }
 0x333   :  { %v561_v38 = vpop.f32.mrf.mxu0 }
 0x334   :  { %v2144_v41 = vadd.f32 %v1598_v39, %v561_v38 }
 0x336   :  { %v580_v44 = vmul.f32 %v2144_v41, %v2144_v41  ;;  %v570_v46 = vsel %vm356_vm6, %v2144_v41, 0.0 }
 0x338   :  { %v582_v50 = vsel %vm356_vm6, %v580_v44, 0.0  ;;  %v2164_v44 = vadd.f32 %v521_v37, %v519_v40 }
 0x33b   :  { %v563_v43 = vpop.f32.mrf.mxu0 }
 0x33c   :  { %v2148_v45 = vadd.f32 %v1598_v39, %v563_v43  ;;  %v518_v39 = vmul.f32 %v516_v31, %v2130_v14 }
 0x33e   :  { %v571_v47 = vsel %vm356_vm6, %v2148_v45, 0.0  ;;  %v581_v48 = vmul.f32 %v2148_v45, %v2148_v45 }
 0x33f   :  { %v572_v49 = vadd.f32 %v571_v47, %v570_v46  ;;  %v2168_v47 = vadd.f32 %v521_v37, %v518_v39 }
 0x340   :  { %v583_v51 = vsel %vm356_vm6, %v581_v48, 0.0 }
 0x341   :  { %v573_v52 = vrot.slane %v572_v49, 4  ;;  %v584_v53 = vadd.f32 %v583_v51, %v582_v50  ;;  %v1547_v50 = vld [vmem:[%s2357_s10 + $0x28] sm:$0xff]  ;;  %v1546_v51 = vld [vmem:[%s2357_s10 + $0x20] sm:$0xff] }
 0x342   :  { %669 = vmatpush.bf16.msrb.mxu3 %v1547_v50 }
 0x343   :  { %v574_v55 = vadd.f32 %v573_v52, %v572_v49  ;;  %v585_v56 = vrot.slane %v584_v53, 4 }
 0x345   :  { %v575_v58 = vrot.slane %v574_v55, 2  ;;  %v586_v59 = vadd.f32 %v585_v56, %v584_v53 }
 0x346   :  { %670 = vmatpush.bf16.msrb.mxu3 %v1546_v51 }
 0x347   :  { %v576_v60 = vadd.f32 %v575_v58, %v574_v55  ;;  %v587_v61 = vrot.slane %v586_v59, 2 }
 0x349   :  { %v577_v63 = vrot.slane %v576_v60, 1  ;;  %v588_v0 = vadd.f32 %v587_v61, %v586_v59 }
 0x34b   :  { %v578_v2 = vadd.f32 %v577_v63, %v576_v60  ;;  %v589_v3 = vrot.slane %v588_v0, 1 }
 0x34d   :  { %v579_v5 = vmul.f32 %v578_v2, %v2057_v36  ;;  %v590_v6 = vadd.f32 %v589_v3, %v588_v0 }
 0x34f   :  { %v591_v7 = vmul.f32 %v590_v6, %v2057_v36  ;;  %v592_v10 = vmul.f32 %v579_v5, %v579_v5 }
 0x351   :  { %v593_v11 = vsub.f32 %v591_v7, %v592_v10 }
 0x353   :  { %v594_v12 = vadd.f32 1e-05, %v593_v11 }
 0x355   :  { %1613 = vrsqrt.f32 %v594_v12  ;;  %vm601_vm15 = vweird.f32 %v594_v12 }
 0x35b   :  { %v1614_v17 = vpop.eup %1613 }
 0x35c   :  { %v596_v19 = vmul.f32 %v1614_v17, %v594_v12  ;;  %vm602_vm14 = vweird.f32 %v1614_v17 }
 0x35d   :  { %vm603_vm2 = vmor %vm601_vm15, %vm602_vm14 }
 0x35e   :  { %v597_v20 = vmul.f32 %v1614_v17, %v596_v19 }
 0x360   :  { %v598_v22 = vmul.f32 0.5, %v597_v20 }
 0x362   :  { %v599_v23 = vsub.f32 1.5, %v598_v22 }
 0x364   :  { %v600_v27 = vmul.f32 %v1614_v17, %v599_v23 }
 0x366   :  { %v604_v28 = vsel %vm603_vm2, %v1614_v17, %v600_v27 }
 0x367   :  { %v605_v30 = vmul.f32 %v604_v28, %v567_v26 }
 0x369   :  { %v606_v34 = vmul.f32 %v605_v30, %v579_v5  ;;  %v609_v35 = vperm.slane %v605_v30, 0 }
 0x36b   :  { %v607_v38 = vsub.f32 %v569_v32, %v606_v34  ;;  %v611_v33 = vmul.f32 %v609_v35, %v2144_v41  ;;  %v612_v42 = vmul.f32 %v609_v35, %v2148_v45  ;;  %v678_v32 = vld [vmem:[#allocation14 + $0x2] sm:$0x1] }
 0x36d   :  { %v614_v43 = vperm.slane %v607_v38, 0  ;;  %v680_v38 = vld [vmem:[#allocation16 + $0x2] sm:$0x1] }
 0x36f   :  { %v2166_v46 = vadd.f32 %v614_v43, %v612_v42  ;;  %v2170_v48 = vadd.f32 %v614_v43, %v611_v33 }
 0x371   :  { %v2174_v49 = vadd.f32 %v2170_v48, %v2168_v47  ;;  %v2178_v13 = vadd.f32 %v2166_v46, %v2164_v44 }
 0x373   :  { %v620_v14 = vmax.f32 %v2174_v49, 0.0  ;;  %v621_v41 = vmax.f32 %v2178_v13, 0.0 }
 0x375   :  { %v622_v45 = vpack.c.bf16 %v621_v41, %v620_v14 }
 0x377   :  { %630 = vmatpush.bf16.msrb.mxu2 %v622_v45 }
 0x37a   :  { %1416 = vmatmul.msk.bf16.vlgmr.msrb.gmra.mxu2 %vm208_vm0, %v2081_v54 }
 0x37b   :  { %840 = vmatpush.bf16.msra.mxu2 %v828_v25 }
 0x37f   :  { %841 = vmatpush.bf16.msra.mxu2 %v826_v29 }
 0x3fd   :  { %v632_v52 = vpop.f32.mrf.mxu2 }
 0x405   :  { %v634_v53 = vpop.f32.mrf.mxu2 }
 0x406   :  { %v637_v55 = vpack.c.bf16 %v634_v53, %v632_v52  ;;  %v822_v53 = vpop.permute.xlu2 %821 }
 0x408   :  { %1429 = vmatmul.msk.bf16.vlgmr.msrb.gmra.mxu3 %vm457_vm10, %v637_v55  ;;  %v824_v55 = vpop.permute.xlu1 %823 }
 0x409   :  { %842 = vmatpush.bf16.msra.mxu2 %v824_v55 }
 0x40d   :  { %843 = vmatpush.bf16.msra.mxu2 %v822_v53 }
 0x48b   :  { %v672_v56 = vpop.f32.mrf.mxu3 }
 0x48c   :  { %v673_v58 = vadd.f32 %v1599_v57, %v672_v56  ;;  %v820_v56 = vpop.permute.xlu2 %819 }
 0x48d   :  { %844 = vmatpush.bf16.msra.mxu2 %v820_v56 }
 0x48e   :  { %v691_v60 = vmul.f32 %v673_v58, %v673_v58  ;;  %v681_v62 = vsel %vm356_vm6, %v673_v58, 0.0 }
 0x490   :  { %v693_v3 = vsel %vm356_vm6, %v691_v60, 0.0 }
 0x493   :  { %v674_v59 = vpop.f32.mrf.mxu3 }
 0x494   :  { %v675_v61 = vadd.f32 %v1599_v57, %v674_v59 }
 0x496   :  { %v682_v63 = vsel %vm356_vm6, %v675_v61, 0.0  ;;  %v692_v0 = vmul.f32 %v675_v61, %v675_v61 }
 0x497   :  { %v683_v2 = vadd.f32 %v682_v63, %v681_v62 }
 0x498   :  { %v694_v4 = vsel %vm356_vm6, %v692_v0, 0.0 }
 0x499   :  { %v684_v5 = vrot.slane %v683_v2, 4  ;;  %v695_v6 = vadd.f32 %v694_v4, %v693_v3 }
 0x49b   :  { %v685_v7 = vadd.f32 %v684_v5, %v683_v2  ;;  %v696_v10 = vrot.slane %v695_v6, 4  ;;  %v1600_v5 = vld [vmem:[#allocation8 + $0x1] ss:$0 sm:$0xff] }
 0x49d   :  { %v686_v8 = vrot.slane %v685_v7, 2  ;;  %v697_v11 = vadd.f32 %v696_v10, %v695_v6 }
 0x49f   :  { %v687_v12 = vadd.f32 %v686_v8, %v685_v7  ;;  %v698_v15 = vrot.slane %v697_v11, 2 }
 0x4a1   :  { %v688_v16 = vrot.slane %v687_v12, 1  ;;  %v699_v17 = vadd.f32 %v698_v15, %v697_v11 }
 0x4a3   :  { %v689_v18 = vadd.f32 %v688_v16, %v687_v12  ;;  %v700_v1 = vrot.slane %v699_v17, 1 }
 0x4a5   :  { %v690_v19 = vmul.f32 %v689_v18, %v2057_v36  ;;  %v701_v20 = vadd.f32 %v700_v1, %v699_v17 }
 0x4a7   :  { %v702_v21 = vmul.f32 %v701_v20, %v2057_v36  ;;  %v703_v22 = vmul.f32 %v690_v19, %v690_v19 }
 0x4a9   :  { %v704_v23 = vsub.f32 %v702_v21, %v703_v22 }
 0x4ab   :  { %v705_v24 = vadd.f32 1e-05, %v704_v23 }
 0x4ad   :  { %1615 = vrsqrt.f32 %v705_v24  ;;  %vm712_vm4 = vweird.f32 %v705_v24 }
 0x4b3   :  { %v1616_v26 = vpop.eup %1615 }
 0x4b4   :  { %v707_v27 = vmul.f32 %v1616_v26, %v705_v24  ;;  %vm713_vm3 = vweird.f32 %v1616_v26 }
 0x4b5   :  { %vm714_vm5 = vmor %vm712_vm4, %vm713_vm3 }
 0x4b6   :  { %v708_v28 = vmul.f32 %v1616_v26, %v707_v27 }
 0x4b8   :  { %v709_v30 = vmul.f32 0.5, %v708_v28 }
 0x4ba   :  { %v710_v31 = vsub.f32 1.5, %v709_v30 }
 0x4bc   :  { %v711_v34 = vmul.f32 %v1616_v26, %v710_v31 }
 0x4be   :  { %v715_v35 = vsel %vm714_vm5, %v1616_v26, %v711_v34 }
 0x4bf   :  { %v716_v37 = vmul.f32 %v715_v35, %v678_v32 }
 0x4c1   :  { %v720_v39 = vperm.slane %v716_v37, 0  ;;  %v717_v40 = vmul.f32 %v716_v37, %v690_v19 }
 0x4c3   :  { %v718_v33 = vsub.f32 %v680_v38, %v717_v40  ;;  %v723_v42 = vmul.f32 %v720_v39, %v675_v61  ;;  %v722_v14 = vmul.f32 %v720_v39, %v673_v58 }
 0x4c5   :  { %v725_v43 = vperm.slane %v718_v33, 0 }
 0x4c7   :  { %v728_v41 = vadd.f32 %v725_v43, %v723_v42  ;;  %v727_v45 = vadd.f32 %v725_v43, %v722_v14 }
 0x4c9   :  { %733 = vrot.lane.b32.xlu1 %v728_v41, %s1892_s28  ;;  %731 = vrot.lane.b32.xlu0 %v727_v45, %s1892_s28  ;;  %v739_v50 = vadd.f32 %v727_v45, %v2170_v48  ;;  %v740_v51 = vadd.f32 %v728_v41, %v2166_v46  ;;  %v870_v41 = vld [vmem:[#allocation10 + $0x1] sm:$0x1] }
 0x4cb   :  { %v1585_v52 = vpack.i.bf16 %v740_v51, %v739_v50 }
 0x4cd   :  { %1586 = vrot.lane.b32.xlu2 %v1585_v52, %s1892_s28  ;;  %v872_v52 = vld [vmem:[#allocation11 + $0x1] sm:$0x1] }
 0x4d1   :  { %817 = vrot.lane.b32.xlu0 %v2121_v9, %s1891_s20 }
 0x527   :  { %v1587_v60 = vpop.permute.xlu2 %1586 }
 0x528   :  { %v1589_v9 = vunpack.i.h.bf16 %v1587_v60  ;;  %v1588_v62 = vunpack.i.l.bf16 %v1587_v60 }
 0x53b   :  { %v734_v57 = vpop.permute.xlu1 %733  ;;  %v732_v58 = vpop.permute.xlu0 %731 }
 0x53c   :  { %v738_v59 = vadd.f32 %v734_v57, %v2164_v44  ;;  %v737_v48 = vadd.f32 %v732_v58, %v2168_v47 }
 0x53e   :  { %v750_v46 = vsel %vm457_vm10, %v2178_v13, %v738_v59  ;;  %v749_v61 = vsel %vm457_vm10, %v2174_v49, %v737_v48  ;;  %v812_v13 = vpop.f32.mrf.mxu0 }
 0x53f   :  { %v752_v63 = vsel %vm356_vm6, %v750_v46, %v1589_v9  ;;  %v751_v0 = vsel %vm356_vm6, %v749_v61, %v1588_v62  ;;  %v1555_v62 = vld [vmem:[%s2357_s10 + $0x38] sm:$0xff] }
 0x540   :  { %v766_v3 = vpack.c.bf16 %v752_v63, %v751_v0  ;;  %976 = vmatpush.bf16.msra.mxu3 %v1555_v62  ;;  %v1554_v63 = vld [vmem:[%s2357_s10 + $0x30] sm:$0xff]  ;;  %v1557_v0 = vld [vmem:[%s2357_s10 + $0x48] sm:$0xff] }
 0x543   :  { %v818_v2 = vpop.permute.xlu0 %817 }
 0x544   :  { %845 = vmatpush.bf16.msra.mxu2 %v818_v2  ;;  %977 = vmatpush.bf16.msra.mxu3 %v1554_v63  ;;  %v1556_v2 = vld [vmem:[%s2357_s10 + $0x40] sm:$0xff] }
 0x546   :  { %v814_v49 = vpop.f32.mrf.mxu0 }
 0x547   :  { %1467 = vmatmul.msk.bf16.vlgmr.msra.gmra.mxu2 %vm228_vm1, %v766_v3 }
 0x5ca   :  { %v847_v44 = vpop.f32.mrf.mxu2 }
 0x5cb   :  { %854 = vrot.lane.b32.xlu1 %v847_v44, %s1892_s28 }
 0x5d2   :  { %v849_v47 = vpop.f32.mrf.mxu2 }
 0x5d3   :  { %856 = vrot.lane.b32.xlu2 %v849_v47, %s1892_s28 }
 0x62d   :  { %v857_v4 = vpop.permute.xlu2 %856 }
 0x62e   :  { %v861_v6 = vsel %vm457_vm10, %v814_v49, %v857_v4 }
 0x62f   :  { %v868_v7 = vadd.f32 %v1600_v5, %v861_v6 }
 0x631   :  { %v884_v11 = vmul.f32 %v868_v7, %v868_v7  ;;  %v874_v15 = vsel %vm356_vm6, %v868_v7, 0.0 }
 0x633   :  { %v886_v1 = vsel %vm356_vm6, %v884_v11, 0.0 }
 0x63d   :  { %v855_v10 = vpop.permute.xlu1 %854 }
 0x63e   :  { %v860_v8 = vsel %vm457_vm10, %v812_v13, %v855_v10 }
 0x63f   :  { %v867_v12 = vadd.f32 %v1600_v5, %v860_v8  ;;  %v1601_v8 = vld [vmem:[#allocation13 + $0x3] ss:$0 sm:$0xff] }
 0x641   :  { %v873_v16 = vsel %vm356_vm6, %v867_v12, 0.0  ;;  %v883_v17 = vmul.f32 %v867_v12, %v867_v12 }
 0x642   :  { %v875_v18 = vadd.f32 %v874_v15, %v873_v16 }
 0x643   :  { %v885_v19 = vsel %vm356_vm6, %v883_v17, 0.0 }
 0x644   :  { %v876_v20 = vrot.slane %v875_v18, 4  ;;  %v887_v21 = vadd.f32 %v886_v1, %v885_v19 }
 0x646   :  { %v877_v22 = vadd.f32 %v876_v20, %v875_v18  ;;  %v888_v23 = vrot.slane %v887_v21, 4 }
 0x648   :  { %v878_v24 = vrot.slane %v877_v22, 2  ;;  %v889_v25 = vadd.f32 %v888_v23, %v887_v21 }
 0x64a   :  { %v879_v26 = vadd.f32 %v878_v24, %v877_v22  ;;  %v890_v27 = vrot.slane %v889_v25, 2 }
 0x64c   :  { %v880_v28 = vrot.slane %v879_v26, 1  ;;  %v891_v29 = vadd.f32 %v890_v27, %v889_v25 }
 0x64e   :  { %v892_v30 = vrot.slane %v891_v29, 1  ;;  %v881_v31 = vadd.f32 %v880_v28, %v879_v26 }
 0x650   :  { %v893_v32 = vadd.f32 %v892_v30, %v891_v29  ;;  %v882_v34 = vmul.f32 %v881_v31, %v2057_v36 }
 0x652   :  { %v894_v35 = vmul.f32 %v893_v32, %v2057_v36  ;;  %v895_v37 = vmul.f32 %v882_v34, %v882_v34 }
 0x654   :  { %v896_v38 = vsub.f32 %v894_v35, %v895_v37 }
 0x656   :  { %v897_v39 = vadd.f32 1e-05, %v896_v38 }
 0x658   :  { %1617 = vrsqrt.f32 %v897_v39  ;;  %vm904_vm8 = vweird.f32 %v897_v39 }
 0x65e   :  { %v1618_v40 = vpop.eup %1617 }
 0x65f   :  { %v899_v33 = vmul.f32 %v1618_v40, %v897_v39  ;;  %vm905_vm7 = vweird.f32 %v1618_v40 }
 0x660   :  { %vm906_vm9 = vmor %vm904_vm8, %vm905_vm7 }
 0x661   :  { %v900_v42 = vmul.f32 %v1618_v40, %v899_v33 }
 0x663   :  { %v901_v43 = vmul.f32 0.5, %v900_v42 }
 0x665   :  { %v902_v14 = vsub.f32 1.5, %v901_v43 }
 0x667   :  { %v903_v45 = vmul.f32 %v1618_v40, %v902_v14 }
 0x669   :  { %v907_v50 = vsel %vm906_vm9, %v1618_v40, %v903_v45  ;;  %v1602_v40 = vld [vmem:[#allocation13 + $0x4] ss:$0 sm:$0xff] }
 0x66a   :  { %v908_v51 = vmul.f32 %v907_v50, %v870_v41 }
 0x66c   :  { %v909_v53 = vmul.f32 %v908_v51, %v882_v34  ;;  %v912_v55 = vperm.slane %v908_v51, 0 }
 0x66e   :  { %v910_v56 = vsub.f32 %v872_v52, %v909_v53  ;;  %v914_v57 = vmul.f32 %v912_v55, %v867_v12  ;;  %v915_v58 = vmul.f32 %v912_v55, %v868_v7 }
 0x670   :  { %v917_v59 = vperm.slane %v910_v56, 0 }
 0x672   :  { %v919_v48 = vadd.f32 %v917_v59, %v914_v57  ;;  %v920_v60 = vadd.f32 %v917_v59, %v915_v58 }
 0x674   :  { %v921_v46 = vmax.f32 %v919_v48, 0.0  ;;  %v922_v61 = vmax.f32 %v920_v60, 0.0 }
 0x676   :  { %v923_v9 = vpack.c.bf16 %v922_v61, %v921_v46 }
 0x678   :  { %931 = vmatpush.bf16.msrb.mxu1 %v923_v9 }
 0x67b   :  { %1468 = vmatmul.msk.bf16.vlgmr.msrb.gmra.mxu1 %vm208_vm0, %v2081_v54 }
 0x67c   :  { %1069 = vmatpush.bf16.msra.mxu1 %v1557_v0 }
 0x680   :  { %1070 = vmatpush.bf16.msra.mxu1 %v1556_v2 }
 0x6f8   :  { %v933_v3 = vpop.f32.mrf.mxu1 }
 0x6f9   :  { %v938_v44 = vpack.c.bf16 %v933_v3, %v933_v3 }
 0x6fb   :  { %v952_v4 = vunpack.c.l.b16 %v938_v44 }
 0x700   :  { %v935_v47 = vpop.f32.mrf.mxu1 }
 0x701   :  { %v939_v13 = vpack.c.bf16 %v935_v47, %v935_v47 }
 0x703   :  { %v953_v49 = vunpack.c.l.b16 %v939_v13 }
 0x705   :  { %v954_v5 = vpack.c.b16 %v953_v49, %v952_v4 }
 0x707   :  { %1046 = vrot.lane.b32.xlu0 %v954_v5, %s1891_s20  ;;  %1481 = vmatmul.msk.bf16.vlgmr.msra.gmra.mxu3 %vm457_vm10, %v954_v5 }
 0x779   :  { %v1047_v6 = vpop.permute.xlu0 %1046 }
 0x77a   :  { %1494 = vmatmul.msk.bf16.vlgmr.msra.gmra.mxu1 %vm457_vm10, %v1047_v6 }
 0x78a   :  { %v979_v7 = vpop.f32.mrf.mxu3 }
 0x78b   :  { %v2242_v12 = vadd.f32 %v1601_v8, %v979_v7 }
 0x78d   :  { %v988_v17 = vsel %vm356_vm6, %v2242_v12, 0.0  ;;  %v998_v18 = vmul.f32 %v2242_v12, %v2242_v12 }
 0x78f   :  { %v1000_v20 = vsel %vm356_vm6, %v998_v18, 0.0 }
 0x792   :  { %v981_v10 = vpop.f32.mrf.mxu3 }
 0x793   :  { %v2240_v11 = vadd.f32 %v1601_v8, %v981_v10 }
 0x795   :  { %v989_v15 = vsel %vm356_vm6, %v2240_v11, 0.0  ;;  %v999_v16 = vmul.f32 %v2240_v11, %v2240_v11 }
 0x796   :  { %v990_v1 = vadd.f32 %v989_v15, %v988_v17  ;;  %v985_v17 = vld [vmem:[#allocation14 + $0x3] sm:$0x1] }
 0x797   :  { %v1001_v19 = vsel %vm356_vm6, %v999_v16, 0.0 }
 0x798   :  { %v991_v21 = vrot.slane %v990_v1, 4  ;;  %v1002_v22 = vadd.f32 %v1001_v19, %v1000_v20 }
 0x79a   :  { %v992_v23 = vadd.f32 %v991_v21, %v990_v1  ;;  %v1003_v24 = vrot.slane %v1002_v22, 4 }
 0x79c   :  { %v993_v25 = vrot.slane %v992_v23, 2  ;;  %v1004_v26 = vadd.f32 %v1003_v24, %v1002_v22  ;;  %v987_v24 = vld [vmem:[#allocation16 + $0x3] sm:$0x1] }
 0x79e   :  { %v994_v27 = vadd.f32 %v993_v25, %v992_v23  ;;  %v1005_v28 = vrot.slane %v1004_v26, 2  ;;  %v1078_v25 = vld [vmem:[#allocation14 + $0x4] sm:$0x1] }
 0x7a0   :  { %v995_v29 = vrot.slane %v994_v27, 1  ;;  %v1006_v30 = vadd.f32 %v1005_v28, %v1004_v26 }
 0x7a2   :  { %v996_v31 = vadd.f32 %v995_v29, %v994_v27  ;;  %v1007_v32 = vrot.slane %v1006_v30, 1 }
 0x7a4   :  { %v997_v34 = vmul.f32 %v996_v31, %v2057_v36  ;;  %v1008_v35 = vadd.f32 %v1007_v32, %v1006_v30  ;;  %v1080_v31 = vld [vmem:[#allocation16 + $0x4] sm:$0x1] }
 0x7a6   :  { %v1009_v37 = vmul.f32 %v1008_v35, %v2057_v36  ;;  %v1010_v38 = vmul.f32 %v997_v34, %v997_v34 }
 0x7a8   :  { %v1011_v33 = vsub.f32 %v1009_v37, %v1010_v38 }
 0x7aa   :  { %v1012_v43 = vadd.f32 1e-05, %v1011_v33 }
 0x7ac   :  { %1619 = vrsqrt.f32 %v1012_v43  ;;  %vm1019_vm12 = vweird.f32 %v1012_v43 }
 0x7b2   :  { %v1620_v60 = vpop.eup %1619 }
 0x7b3   :  { %v1014_v63 = vmul.f32 %v1620_v60, %v1012_v43  ;;  %vm1020_vm11 = vweird.f32 %v1620_v60 }
 0x7b4   :  { %vm1021_vm13 = vmor %vm1019_vm12, %vm1020_vm11 }
 0x7b5   :  { %v1015_v47 = vmul.f32 %v1620_v60, %v1014_v63 }
 0x7b7   :  { %v1016_v6 = vmul.f32 0.5, %v1015_v47 }
 0x7b9   :  { %v1017_v8 = vsub.f32 1.5, %v1016_v6 }
 0x7bb   :  { %v1018_v15 = vmul.f32 %v1620_v60, %v1017_v8 }
 0x7bd   :  { %v1022_v18 = vsel %vm1021_vm13, %v1620_v60, %v1018_v15 }
 0x7be   :  { %v1023_v20 = vmul.f32 %v1022_v18, %v985_v17 }
 0x7c0   :  { %v1024_v23 = vmul.f32 %v1023_v20, %v997_v34  ;;  %v1027_v30 = vperm.slane %v1023_v20, 0 }
 0x7c2   :  { %v1025_v28 = vsub.f32 %v987_v24, %v1024_v23 }
 0x7c4   :  { %v1032_v37 = vperm.slane %v1025_v28, 0 }
 0x7f7   :  { %v1072_v39 = vpop.f32.mrf.mxu1 }
 0x7f8   :  { %v2256_v42 = vadd.f32 %v1602_v40, %v1072_v39  ;;  %v1029_v39 = vmul.f32 %v1027_v30, %v2242_v12 }
 0x7fa   :  { %v1091_v41 = vmul.f32 %v2256_v42, %v2256_v42  ;;  %v1081_v50 = vsel %vm356_vm6, %v2256_v42, 0.0 }
 0x7fc   :  { %v1093_v55 = vsel %vm356_vm6, %v1091_v41, 0.0 }
 0x7ff   :  { %v1074_v14 = vpop.f32.mrf.mxu1 }
 0x800   :  { %v2260_v45 = vadd.f32 %v1602_v40, %v1074_v14  ;;  %v1030_v40 = vmul.f32 %v1027_v30, %v2240_v11  ;;  %v2276_v14 = vadd.f32 %v1032_v37, %v1029_v39 }
 0x802   :  { %v1082_v51 = vsel %vm356_vm6, %v2260_v45, 0.0  ;;  %v1092_v52 = vmul.f32 %v2260_v45, %v2260_v45  ;;  %v2278_v41 = vadd.f32 %v1032_v37, %v1030_v40 }
 0x803   :  { %v1083_v53 = vadd.f32 %v1082_v51, %v1081_v50 }
 0x804   :  { %v1094_v56 = vsel %vm356_vm6, %v1092_v52, 0.0 }
 0x805   :  { %v1084_v57 = vrot.slane %v1083_v53, 4  ;;  %v1095_v58 = vadd.f32 %v1094_v56, %v1093_v55  ;;  %v1558_v55 = vld [vmem:[%s2357_s10 + $0x50] sm:$0xff] }
 0x807   :  { %v1085_v59 = vadd.f32 %v1084_v57, %v1083_v53  ;;  %v1096_v48 = vrot.slane %v1095_v58, 4  ;;  %v1559_v53 = vld [vmem:[%s2357_s10 + $0x58] sm:$0xff] }
 0x808   :  { %1180 = vmatpush.bf16.msrb.mxu0 %v1559_v53  ;;  %v1563_v53 = vld [vmem:[%s2361_s14 + $0x18] sm:$0xff] }
 0x809   :  { %v1086_v46 = vrot.slane %v1085_v59, 2  ;;  %v1097_v61 = vadd.f32 %v1096_v48, %v1095_v58  ;;  %v1603_v48 = vld [vmem:[#allocation13 + $0x5] ss:$0 sm:$0xff] }
 0x80b   :  { %v1087_v9 = vadd.f32 %v1086_v46, %v1085_v59  ;;  %v1098_v62 = vrot.slane %v1097_v61, 2 }
 0x80c   :  { %1181 = vmatpush.bf16.msrb.mxu0 %v1558_v55  ;;  %v1560_v55 = vld [vmem:[%s2361_s14] sm:$0xff] }
 0x80d   :  { %v1088_v0 = vrot.slane %v1087_v9, 1  ;;  %v1099_v2 = vadd.f32 %v1098_v62, %v1097_v61 }
 0x80f   :  { %v1089_v3 = vadd.f32 %v1088_v0, %v1087_v9  ;;  %v1100_v44 = vrot.slane %v1099_v2, 1 }
 0x811   :  { %v1090_v13 = vmul.f32 %v1089_v3, %v2057_v36  ;;  %v1101_v4 = vadd.f32 %v1100_v44, %v1099_v2 }
 0x813   :  { %v1102_v49 = vmul.f32 %v1101_v4, %v2057_v36  ;;  %v1103_v5 = vmul.f32 %v1090_v13, %v1090_v13 }
 0x815   :  { %v1104_v7 = vsub.f32 %v1102_v49, %v1103_v5 }
 0x817   :  { %v1105_v10 = vadd.f32 1e-05, %v1104_v7 }
 0x819   :  { %1621 = vrsqrt.f32 %v1105_v10  ;;  %vm1112_vm15 = vweird.f32 %v1105_v10 }
 0x81f   :  { %v1622_v16 = vpop.eup %1621 }
 0x820   :  { %v1107_v1 = vmul.f32 %v1622_v16, %v1105_v10  ;;  %vm1113_vm14 = vweird.f32 %v1622_v16 }
 0x821   :  { %vm1114_vm2 = vmor %vm1112_vm15, %vm1113_vm14 }
 0x822   :  { %v1108_v19 = vmul.f32 %v1622_v16, %v1107_v1 }
 0x824   :  { %v1109_v21 = vmul.f32 0.5, %v1108_v19 }
 0x826   :  { %v1110_v22 = vsub.f32 1.5, %v1109_v21 }
 0x828   :  { %v1111_v26 = vmul.f32 %v1622_v16, %v1110_v22 }
 0x82a   :  { %v1115_v27 = vsel %vm1114_vm2, %v1622_v16, %v1111_v26 }
 0x82b   :  { %v1116_v29 = vmul.f32 %v1115_v27, %v1078_v25  ;;  %v1189_v27 = vld [vmem:[#allocation14 + $0x5] sm:$0x1] }
 0x82d   :  { %v1117_v32 = vmul.f32 %v1116_v29, %v1090_v13  ;;  %v1120_v35 = vperm.slane %v1116_v29, 0 }
 0x82f   :  { %v1118_v38 = vsub.f32 %v1080_v31, %v1117_v32  ;;  %v1122_v34 = vmul.f32 %v1120_v35, %v2256_v42  ;;  %v1123_v33 = vmul.f32 %v1120_v35, %v2260_v45  ;;  %v1191_v31 = vld [vmem:[#allocation16 + $0x5] sm:$0x1] }
 0x831   :  { %v1125_v43 = vperm.slane %v1118_v38, 0 }
 0x833   :  { %v2280_v50 = vadd.f32 %v1125_v43, %v1122_v34  ;;  %v2282_v51 = vadd.f32 %v1125_v43, %v1123_v33 }
 0x835   :  { %v2286_v52 = vadd.f32 %v2282_v51, %v2278_v41  ;;  %v2290_v11 = vadd.f32 %v2280_v50, %v2276_v14 }
 0x837   :  { %v1131_v12 = vmax.f32 %v2290_v11, 0.0  ;;  %v1132_v42 = vmax.f32 %v2286_v52, 0.0 }
 0x839   :  { %v1133_v45 = vpack.c.bf16 %v1132_v42, %v1131_v12  ;;  %v1565_v42 = vld [vmem:[%s2361_s14 + $0x28] sm:$0xff] }
 0x83a   :  { %1322 = vmatpush.bf16.msrb.mxu2 %v1565_v42 }
 0x83b   :  { %1141 = vmatpush.bf16.msrb.mxu3 %v1133_v45  ;;  %v1564_v45 = vld [vmem:[%s2361_s14 + $0x20] sm:$0xff] }
 0x83e   :  { %1495 = vmatmul.msk.bf16.vlgmr.msrb.gmra.mxu3 %vm208_vm0, %v2081_v54  ;;  %1323 = vmatpush.bf16.msrb.mxu2 %v1564_v45 }
 0x842   :  { %1324 = vmatpush.bf16.msrb.mxu2 %v1563_v53 }
 0x8c1   :  { %v1143_v56 = vpop.f32.mrf.mxu3 }
 0x8c9   :  { %v1145_v57 = vpop.f32.mrf.mxu3 }
 0x8ca   :  { %v1148_v58 = vpack.c.bf16 %v1145_v57, %v1143_v56 }
 0x8cc   :  { %1508 = vmatmul.msk.bf16.vlgmr.msrb.gmra.mxu0 %vm457_vm10, %v1148_v58 }
 0x949   :  { %v1183_v59 = vpop.f32.mrf.mxu0 }
 0x94a   :  { %v1184_v60 = vadd.f32 %v1603_v48, %v1183_v59 }
 0x94c   :  { %v1202_v54 = vmul.f32 %v1184_v60, %v1184_v60  ;;  %v1192_v9 = vsel %vm356_vm6, %v1184_v60, 0.0 }
 0x94e   :  { %v1204_v2 = vsel %vm356_vm6, %v1202_v54, 0.0 }
 0x951   :  { %v1185_v46 = vpop.f32.mrf.mxu0 }
 0x952   :  { %v1186_v61 = vadd.f32 %v1603_v48, %v1185_v46 }
 0x954   :  { %v1193_v62 = vsel %vm356_vm6, %v1186_v61, 0.0  ;;  %v1203_v63 = vmul.f32 %v1186_v61, %v1186_v61 }
 0x955   :  { %v1194_v0 = vadd.f32 %v1193_v62, %v1192_v9 }
 0x956   :  { %v1205_v3 = vsel %vm356_vm6, %v1203_v63, 0.0 }
 0x957   :  { %v1195_v44 = vrot.slane %v1194_v0, 4  ;;  %v1206_v47 = vadd.f32 %v1205_v3, %v1204_v2 }
 0x959   :  { %v1196_v13 = vadd.f32 %v1195_v44, %v1194_v0  ;;  %v1207_v4 = vrot.slane %v1206_v47, 4 }
 0x95b   :  { %v1197_v49 = vrot.slane %v1196_v13, 2  ;;  %v1208_v5 = vadd.f32 %v1207_v4, %v1206_v47 }
 0x95d   :  { %v1198_v6 = vadd.f32 %v1197_v49, %v1196_v13  ;;  %v1209_v7 = vrot.slane %v1208_v5, 2 }
 0x95f   :  { %v1199_v10 = vrot.slane %v1198_v6, 1  ;;  %v1210_v8 = vadd.f32 %v1209_v7, %v1208_v5 }
 0x961   :  { %v1200_v15 = vadd.f32 %v1199_v10, %v1198_v6  ;;  %v1211_v16 = vrot.slane %v1210_v8, 1 }
 0x963   :  { %v1201_v17 = vmul.f32 %v1200_v15, %v2057_v36  ;;  %v1212_v18 = vadd.f32 %v1211_v16, %v1210_v8 }
 0x965   :  { %v1213_v1 = vmul.f32 %v1212_v18, %v2057_v36  ;;  %v1214_v19 = vmul.f32 %v1201_v17, %v1201_v17 }
 0x967   :  { %v1215_v20 = vsub.f32 %v1213_v1, %v1214_v19 }
 0x969   :  { %v1216_v21 = vadd.f32 1e-05, %v1215_v20 }
 0x96b   :  { %1623 = vrsqrt.f32 %v1216_v21  ;;  %vm1223_vm3 = vweird.f32 %v1216_v21 }
 0x971   :  { %v1624_v22 = vpop.eup %1623 }
 0x972   :  { %v1218_v23 = vmul.f32 %v1624_v22, %v1216_v21  ;;  %vm1224_vm0 = vweird.f32 %v1624_v22 }
 0x973   :  { %vm1225_vm4 = vmor %vm1223_vm3, %vm1224_vm0 }
 0x974   :  { %v1219_v24 = vmul.f32 %v1624_v22, %v1218_v23 }
 0x976   :  { %v1220_v25 = vmul.f32 0.5, %v1219_v24 }
 0x978   :  { %v1221_v26 = vsub.f32 1.5, %v1220_v25 }
 0x97a   :  { %v1222_v28 = vmul.f32 %v1624_v22, %v1221_v26 }
 0x97c   :  { %v1226_v29 = vsel %vm1225_vm4, %v1624_v22, %v1222_v28 }
 0x97d   :  { %v1227_v30 = vmul.f32 %v1226_v29, %v1189_v27 }
 0x97f   :  { %v1231_v32 = vperm.slane %v1227_v30, 0  ;;  %v1228_v35 = vmul.f32 %v1227_v30, %v1201_v17 }
 0x981   :  { %v1229_v36 = vsub.f32 %v1191_v31, %v1228_v35  ;;  %v1234_v37 = vmul.f32 %v1231_v32, %v1186_v61  ;;  %v1233_v39 = vmul.f32 %v1231_v32, %v1184_v60 }
 0x983   :  { %v1236_v38 = vperm.slane %v1229_v36, 0 }
 0x985   :  { %v1239_v40 = vadd.f32 %v1236_v38, %v1234_v37  ;;  %v1238_v34 = vadd.f32 %v1236_v38, %v1233_v39 }
 0x987   :  { %1244 = vrot.lane.b32.xlu2 %v1239_v40, %s1892_s28  ;;  %1242 = vrot.lane.b32.xlu1 %v1238_v34, %s1892_s28  ;;  %v1250_v33 = vadd.f32 %v1238_v34, %v2280_v50  ;;  %v1251_v43 = vadd.f32 %v1239_v40, %v2282_v51  ;;  %v1562_v50 = vld [vmem:[%s2361_s14 + $0x10] sm:$0xff]  ;;  %v1561_v51 = vld [vmem:[%s2361_s14 + $0x8] sm:$0xff] }
 0x988   :  { %1325 = vmatpush.bf16.msrb.mxu2 %v1562_v50 }
 0x989   :  { %v1590_v12 = vpack.i.bf16 %v1251_v43, %v1250_v33 }
 0x98b   :  { %1591 = vrot.lane.b32.xlu0 %v1590_v12, %s1892_s28 }
 0x98c   :  { %1326 = vmatpush.bf16.msrb.mxu2 %v1561_v51 }
 0x990   :  { %1327 = vmatpush.bf16.msrb.mxu2 %v1560_v55 }
 0x9e1   :  { %v1245_v56 = vpop.permute.xlu2 %1244 }
 0x9e2   :  { %v1249_v58 = vadd.f32 %v1245_v56, %v2278_v41 }
 0x9e4   :  { %v1261_v54 = vsel %vm457_vm10, %v2286_v52, %v1249_v58 }
 0x9f9   :  { %v1243_v57 = vpop.permute.xlu1 %1242 }
 0x9fa   :  { %v1248_v59 = vadd.f32 %v1243_v57, %v2276_v14  ;;  %v1604_v14 = vld [vmem:[%s2362_s15] ss:$0 sm:$0xff] }
 0x9fc   :  { %v1260_v61 = vsel %vm457_vm10, %v2290_v11, %v1248_v59 }
 0x9fd   :  { %v1592_v48 = vpop.permute.xlu0 %1591 }
 0x9fe   :  { %v1594_v60 = vunpack.i.h.bf16 %v1592_v48  ;;  %v1593_v46 = vunpack.i.l.bf16 %v1592_v48 }
 0xa00   :  { %v1263_v9 = vsel %vm356_vm6, %v1261_v54, %v1594_v60  ;;  %v1262_v62 = vsel %vm356_vm6, %v1260_v61, %v1593_v46 }
 0xa01   :  { %v1264_v63 = vpack.c.bf16 %v1263_v9, %v1262_v62 }
 0xa03   :  { %1533 = vmatmul.msk.bf16.vlgmr.msrb.gmra.mxu2 %vm228_vm1, %v1264_v63 }
 0xa86   :  { %v1329_v41 = vpop.f32.mrf.mxu2 }
 0xa87   :  { %v1330_v0 = vadd.f32 %v1604_v14, %v1329_v41 }
 0xa89   :  { %1334 = vst [vmem:[#allocation17] sm:$0xff] %v1330_v0 }
 0xa8e   :  { %v1331_v52 = vpop.f32.mrf.mxu2 }
 0xa8f   :  { %v1332_v11 = vadd.f32 %v1604_v14, %v1331_v52 }
 0xa91   :  { %1335 = vst [vmem:[#allocation17 + $0x8] sm:$0xff] %v1332_v11 }
 0xa92   :  { %1348 = dma.vmem_to_hbm [thread:$0]  %s1341_s5, 256, %s1343_s29, [#allocation4], %s1894_s8, %s1894_s8, %s1895_s11  }
 0xa93   :  { %1875 = dma.done.wait [#allocation4], 256  }
 0xa94   :  { %1876 = vsyncadd [#allocation4], 4294967040 }
 0xa95   :  { %1353 = vsyncpa [#allocation3], 1 }
 0xa96   :  { %1354 = vsyncpa [#allocation6], 1 }
 0xa97   :  { %1355 = vsyncpa [#allocation9], 1 }
 0xa98   :  { %1356 = vsyncpa [#allocation12], 1 }
 0xa99   :  { %1357 = vsyncpa [#allocation15], 1 }
 0xa9a   :  { %1358 = vsyncpa [#allocation4], 1 }

</bundles_post_ra>
